<compile_context>
chip_gen: v5e
topology: v5e:2x2
jax: 0.10.0
libtpu: 0.0.40
codegen_flags: <defaults>
</compile_context>

<pallas_src>
import math
from functools import partial

import jax
import jax.numpy as jnp
from jax.experimental import pallas as pl
from jax.experimental.pallas import tpu as pltpu


# ----------------------------- in-kernel helpers -----------------------------

def _layernorm(x, g, b, eps=1e-6):
    # Annotated-Transformer LayerNorm: unbiased std, eps added to std (not var).
    n = x.shape[-1]
    mean = jnp.mean(x, axis=-1, keepdims=True)
    xc = x - mean
    var = jnp.sum(xc * xc, axis=-1, keepdims=True) * (1.0 / (n - 1))
    std = jnp.sqrt(var)
    return g * xc * pl.reciprocal(std + eps, approx=True) + b


def _softmax(x):
    m = jnp.max(x, axis=-1, keepdims=True)
    e = jnp.exp(x - m)
    s = jnp.sum(e, axis=-1, keepdims=True)
    return e * pl.reciprocal(s, approx=True)


# ----------------------------- fused encoder kernel --------------------------

def fused_encoder_kernel(n_head,
                         x_ref, bias_ref,
                         wq_ref, bq_ref, wk_ref, bk_ref, wv_ref, bv_ref,
                         wo_ref, bo_ref, ln1g_ref, ln1b_ref,
                         w1_ref, b1_ref, w2_ref, b2_ref, ln2g_ref, ln2b_ref,
                         lnfg_ref, lnfb_ref, wfc_ref, bfc_ref,
                         o_ref, x_scr):
    """Grid = (batch_block, layer). One full encoder layer per step; activations
    stay resident in VMEM scratch across the layer axis."""
    l = pl.program_id(1)

    # ---- load embedded inputs into the persistent activation buffer ----
    @pl.when(l == 0)
    def _():
        x_scr[...] = x_ref[...]

    x = x_scr[...]                          # (bb, S, D)
    bb, S, D = x.shape
    N = bb * S
    dk = D // n_head
    scale = 1.0 / math.sqrt(dk)
    bias = bias_ref[...]                    # (bb, 1, S) additive: 0 valid / -1e9 pad

    # ---- sublayer 1: x + SelfAttn(LayerNorm(x))  (dropout = identity, eval) ----
    xn = _layernorm(x.reshape(N, D), ln1g_ref[0], ln1b_ref[0])          # (N, D)
    q = (jnp.dot(xn, wq_ref[0], preferred_element_type=jnp.float32)
         + bq_ref[0]).reshape(bb, S, D)
    k = (jnp.dot(xn, wk_ref[0], preferred_element_type=jnp.float32)
         + bk_ref[0]).reshape(bb, S, D)
    v = (jnp.dot(xn, wv_ref[0], preferred_element_type=jnp.float32)
         + bv_ref[0]).reshape(bb, S, D)

    # TODO(synk): heads use a static loop of batched 3-D einsums; a single
    # (B*H)-merged dot_general needs a 4-D major-dim transpose that Mosaic does
    # not lower cleanly at this layout.
    head_ctx = []
    for h in range(n_head):                                   # static, small
        sl = slice(h * dk, (h + 1) * dk)
        s = jnp.einsum('bqd,bkd->bqk', q[..., sl], k[..., sl],
                       preferred_element_type=jnp.float32) * scale + bias
        p = _softmax(s)                                       # (bb, S, S)
        head_ctx.append(jnp.einsum('bqk,bkd->bqd', p, v[..., sl],
                                   preferred_element_type=jnp.float32))
    ctx = jnp.concatenate(head_ctx, axis=-1).reshape(N, D)
    attn = jnp.dot(ctx, wo_ref[0], preferred_element_type=jnp.float32) + bo_ref[0]
    x1 = x + attn.reshape(bb, S, D)

    # ---- sublayer 2: x1 + FFN(LayerNorm(x1)) ----
    xn2 = _layernorm(x1.reshape(N, D), ln2g_ref[0], ln2b_ref[0])
    h1 = jnp.maximum(
        jnp.dot(xn2, w1_ref[0], preferred_element_type=jnp.float32) + b1_ref[0], 0.0)
    ff = jnp.dot(h1, w2_ref[0], preferred_element_type=jnp.float32) + b2_ref[0]
    x2 = x1 + ff.reshape(bb, S, D)
    x_scr[...] = x2

    # ---- at the last layer: final LayerNorm + last-token feature + fc ----
    @pl.when(l == pl.num_programs(1) - 1)
    def _():
        x_last = x2[:, S - 1, :]                              # (bb, D)
        xn_f = _layernorm(x_last, lnfg_ref[...], lnfb_ref[...])
        o_ref[...] = (jnp.dot(xn_f, wfc_ref[...],
                              preferred_element_type=jnp.float32) + bfc_ref[...])


# ----------------------------- parameters ------------------------------------

def _linear_init(key, fan_in, fan_out):
    k1, k2 = jax.random.split(key)
    bound = 1.0 / math.sqrt(fan_in)
    w = jax.random.uniform(k1, (fan_in, fan_out), jnp.float32, -bound, bound)
    b = jax.random.uniform(k2, (1, fan_out), jnp.float32, -bound, bound)
    return w, b


def _stacked_linear(key, fan_in, fan_out, n):
    ws, bs = [], []
    for k in jax.random.split(key, n):
        w, b = _linear_init(k, fan_in, fan_out)
        ws.append(w)
        bs.append(b)
    return jnp.stack(ws), jnp.stack(bs)          # (n, fan_in, fan_out), (n, 1, fan_out)


def _positional_encoding(d_model, max_len):
    pos = jnp.arange(max_len, dtype=jnp.float32)[:, None]
    div = jnp.exp(jnp.arange(0, d_model, 2, dtype=jnp.float32)
                  * (-math.log(10000.0) / d_model))
    pe = jnp.zeros((max_len, d_model), jnp.float32)
    pe = pe.at[:, 0::2].set(jnp.sin(pos * div))
    pe = pe.at[:, 1::2].set(jnp.cos(pos * div))
    return pe


def init_params(key, n_token, d_model, n_head, n_hidden, n_blocks, max_len=64):
    keys = jax.random.split(key, 8)
    wq, bq = _stacked_linear(keys[1], d_model, d_model, n_blocks)
    wk, bk = _stacked_linear(keys[2], d_model, d_model, n_blocks)
    wv, bv = _stacked_linear(keys[3], d_model, d_model, n_blocks)
    wo, bo = _stacked_linear(keys[4], d_model, d_model, n_blocks)
    w1, b1 = _stacked_linear(keys[5], d_model, n_hidden, n_blocks)
    w2, b2 = _stacked_linear(keys[6], n_hidden, d_model, n_blocks)
    w_fc, b_fc = _linear_init(keys[7], d_model, 2)
    ones = jnp.ones((n_blocks, 1, d_model), jnp.float32)
    zeros = jnp.zeros((n_blocks, 1, d_model), jnp.float32)
    return {
        "emb": jax.random.normal(keys[0], (n_token, d_model), jnp.float32),
        "pe": _positional_encoding(d_model, max_len),
        "wq": wq, "bq": bq, "wk": wk, "bk": bk, "wv": wv, "bv": bv,
        "wo": wo, "bo": bo,
        "ln1_g": ones, "ln1_b": zeros,
        "w1": w1, "b1": b1, "w2": w2, "b2": b2,
        "ln2_g": ones, "ln2_b": zeros,
        "ln_f_g": jnp.ones((1, d_model), jnp.float32),
        "ln_f_b": jnp.zeros((1, d_model), jnp.float32),
        "w_fc": w_fc, "b_fc": b_fc,
    }


# ----------------------------- forward ---------------------------------------

def transformer_forward(params, tokens, src_pad_idx, n_head):
    B, S = tokens.shape
    D = params["emb"].shape[1]
    L = params["wq"].shape[0]
    Hf = params["w1"].shape[2]

    # make_src_mask -> additive key bias (0 valid / -1e9 pad), computed once.
    mask = (tokens != src_pad_idx).astype(jnp.float32)        # (B, S)
    attn_bias = ((mask - 1.0) * 1e9)[:, None, :]              # (B, 1, S)

    # src_embed: Embedding(x) * sqrt(D) + positional encoding (JAX glue: gather + add).
    # TODO(synk): dropout(p=0.5) in PositionalEncoding / sublayers omitted (eval mode).
    x = params["emb"][tokens] * math.sqrt(D) + params["pe"][:S]

    # Batch block = whole batch at this toy size; for large B on v7x set bb = B // 2
    # so the "parallel" leading grid axis feeds both TensorCores.
    bb = B
    nb = B // bb
    grid = (nb, L)

    def per_layer(shape):
        nz = len(shape)
        return pl.BlockSpec((1,) + shape, lambda b, l, _nz=nz: (l,) + (0,) * _nz)

    def const(shape):
        nz = len(shape)
        return pl.BlockSpec(shape, lambda b, l, _nz=nz: (0,) * _nz)

    in_specs = [
        pl.BlockSpec((bb, S, D), lambda b, l: (b, 0, 0)),     # x (embedded)
        pl.BlockSpec((bb, 1, S), lambda b, l: (b, 0, 0)),     # additive attn bias
        per_layer((D, D)), per_layer((1, D)),                 # wq, bq
        per_layer((D, D)), per_layer((1, D)),                 # wk, bk
        per_layer((D, D)), per_layer((1, D)),                 # wv, bv
        per_layer((D, D)), per_layer((1, D)),                 # wo, bo
        per_layer((1, D)), per_layer((1, D)),                 # ln1 gamma/beta
        per_layer((D, Hf)), per_layer((1, Hf)),               # w1, b1
        per_layer((Hf, D)), per_layer((1, D)),                # w2, b2
        per_layer((1, D)), per_layer((1, D)),                 # ln2 gamma/beta
        const((1, D)), const((1, D)),                         # final LN gamma/beta
        const((D, 2)), const((1, 2)),                         # fc weight/bias
    ]

    out = pl.pallas_call(
        partial(fused_encoder_kernel, n_head),
        out_shape=jax.ShapeDtypeStruct((B, 2), jnp.float32),
        grid=grid,
        in_specs=in_specs,
        out_specs=pl.BlockSpec((bb, 2), lambda b, l: (b, 0)),
        scratch_shapes=[pltpu.VMEM((bb, S, D), jnp.float32)],  # resident activations
        compiler_params=pltpu.CompilerParams(
            dimension_semantics=("parallel", "arbitrary")),
    )(x, attn_bias,
      params["wq"], params["bq"], params["wk"], params["bk"],
      params["wv"], params["bv"], params["wo"], params["bo"],
      params["ln1_g"], params["ln1_b"],
      params["w1"], params["b1"], params["w2"], params["b2"],
      params["ln2_g"], params["ln2_b"],
      params["ln_f_g"], params["ln_f_b"], params["w_fc"], params["b_fc"])
    return out


# ----------------------------- main ------------------------------------------

if __name__ == "__main__":
    n_token, d_model, n_head, n_hidden, n_blocks = 50, 32, 4, 64, 2
    src_pad_idx = 0
    B, S = 2, 8

    key = jax.random.PRNGKey(0)
    pkey, tkey = jax.random.split(key)
    params = init_params(pkey, n_token, d_model, n_head, n_hidden, n_blocks)

    tokens = jax.random.randint(tkey, (B, S), 1, n_token, dtype=jnp.int32)
    tokens = tokens.at[0, :2].set(src_pad_idx)   # include padding to exercise the mask

    out = transformer_forward(params, tokens, src_pad_idx, n_head)
    out = jax.block_until_ready(out)
    assert out.shape == (B, 2) and out.dtype == jnp.float32
    assert bool(jnp.all(jnp.isfinite(out)))
    print("KERNEL_OK")
</pallas_src>

<mosaic_0001>
module attributes {stable_mosaic.version = 11 : i64} {
  func.func @fused_encoder_kernel(%arg0: i32, %arg1: i32, %arg2: memref<2x8x32xf32, #tpu.memory_space<vmem>>, %arg3: memref<2x1x8xf32, #tpu.memory_space<vmem>>, %arg4: memref<1x32x32xf32, #tpu.memory_space<vmem>>, %arg5: memref<1x1x32xf32, #tpu.memory_space<vmem>>, %arg6: memref<1x32x32xf32, #tpu.memory_space<vmem>>, %arg7: memref<1x1x32xf32, #tpu.memory_space<vmem>>, %arg8: memref<1x32x32xf32, #tpu.memory_space<vmem>>, %arg9: memref<1x1x32xf32, #tpu.memory_space<vmem>>, %arg10: memref<1x32x32xf32, #tpu.memory_space<vmem>>, %arg11: memref<1x1x32xf32, #tpu.memory_space<vmem>>, %arg12: memref<1x1x32xf32, #tpu.memory_space<vmem>>, %arg13: memref<1x1x32xf32, #tpu.memory_space<vmem>>, %arg14: memref<1x32x64xf32, #tpu.memory_space<vmem>>, %arg15: memref<1x1x64xf32, #tpu.memory_space<vmem>>, %arg16: memref<1x64x32xf32, #tpu.memory_space<vmem>>, %arg17: memref<1x1x32xf32, #tpu.memory_space<vmem>>, %arg18: memref<1x1x32xf32, #tpu.memory_space<vmem>>, %arg19: memref<1x1x32xf32, #tpu.memory_space<vmem>>, %arg20: memref<1x32xf32, #tpu.memory_space<vmem>>, %arg21: memref<1x32xf32, #tpu.memory_space<vmem>>, %arg22: memref<32x2xf32, #tpu.memory_space<vmem>>, %arg23: memref<1x2xf32, #tpu.memory_space<vmem>>, %arg24: memref<2x2xf32, #tpu.memory_space<vmem>>, %arg25: memref<2x8x32xf32, #tpu.memory_space<vmem>>) attributes {dimension_semantics = [#tpu.dimension_semantics<parallel>, #tpu.dimension_semantics<arbitrary>], iteration_bounds = array<i64: 1, 2>, scalar_prefetch = 0 : i64, scratch_operands = 1 : i64, tpu.core_type = #tpu.core_type<tc>, window_params = [{transform_indices = @transform_0, window_bounds = array<i64: 2, 8, 32>}, {transform_indices = @transform_1, window_bounds = array<i64: 2, 1, 8>}, {transform_indices = @transform_2, window_bounds = array<i64: 1, 32, 32>}, {transform_indices = @transform_3, window_bounds = array<i64: 1, 1, 32>}, {transform_indices = @transform_4, window_bounds = array<i64: 1, 32, 32>}, {transform_indices = @transform_5, window_bounds = array<i64: 1, 1, 32>}, {transform_indices = @transform_6, window_bounds = array<i64: 1, 32, 32>}, {transform_indices = @transform_7, window_bounds = array<i64: 1, 1, 32>}, {transform_indices = @transform_8, window_bounds = array<i64: 1, 32, 32>}, {transform_indices = @transform_9, window_bounds = array<i64: 1, 1, 32>}, {transform_indices = @transform_10, window_bounds = array<i64: 1, 1, 32>}, {transform_indices = @transform_11, window_bounds = array<i64: 1, 1, 32>}, {transform_indices = @transform_12, window_bounds = array<i64: 1, 32, 64>}, {transform_indices = @transform_13, window_bounds = array<i64: 1, 1, 64>}, {transform_indices = @transform_14, window_bounds = array<i64: 1, 64, 32>}, {transform_indices = @transform_15, window_bounds = array<i64: 1, 1, 32>}, {transform_indices = @transform_16, window_bounds = array<i64: 1, 1, 32>}, {transform_indices = @transform_17, window_bounds = array<i64: 1, 1, 32>}, {pipeline_mode = #tpu.pipeline_mode<synchronous>, transform_indices = @transform_18, window_bounds = array<i64: 1, 32>}, {pipeline_mode = #tpu.pipeline_mode<synchronous>, transform_indices = @transform_19, window_bounds = array<i64: 1, 32>}, {pipeline_mode = #tpu.pipeline_mode<synchronous>, transform_indices = @transform_20, window_bounds = array<i64: 32, 2>}, {pipeline_mode = #tpu.pipeline_mode<synchronous>, transform_indices = @transform_21, window_bounds = array<i64: 1, 2>}, {transform_indices = @transform_22, window_bounds = array<i64: 2, 2>}]} {
    %c0_i32 = arith.constant 0 : i32
    %0 = arith.cmpi eq, %arg1, %c0_i32 : i32
    %1 = arith.extui %0 : i1 to i32
    %c0_i32_0 = arith.constant 0 : i32
    %2 = arith.cmpi ne, %1, %c0_i32_0 : i32
    scf.if %2 {
      %c0_94 = arith.constant 0 : index
      %c0_95 = arith.constant 0 : index
      %c0_96 = arith.constant 0 : index
      %190 = vector.load %arg2[%c0_94, %c0_95, %c0_96] : memref<2x8x32xf32, #tpu.memory_space<vmem>>, vector<2x8x32xf32>
      %c0_97 = arith.constant 0 : index
      %c0_98 = arith.constant 0 : index
      %c0_99 = arith.constant 0 : index
      %191 = vector.load %arg25[%c0_97, %c0_98, %c0_99] : memref<2x8x32xf32, #tpu.memory_space<vmem>>, vector<2x8x32xf32>
      tpu.vector_store %arg25[%c0_97, %c0_98, %c0_99], %190 {strides = array<i32>} : memref<2x8x32xf32, #tpu.memory_space<vmem>>, vector<2x8x32xf32>,
    } else {
    }
    %c0 = arith.constant 0 : index
    %c0_1 = arith.constant 0 : index
    %c0_2 = arith.constant 0 : index
    %3 = vector.load %arg25[%c0, %c0_1, %c0_2] : memref<2x8x32xf32, #tpu.memory_space<vmem>>, vector<2x8x32xf32>
    %c0_3 = arith.constant 0 : index
    %c0_4 = arith.constant 0 : index
    %c0_5 = arith.constant 0 : index
    %4 = vector.load %arg3[%c0_3, %c0_4, %c0_5] : memref<2x1x8xf32, #tpu.memory_space<vmem>>, vector<2x1x8xf32>
    %5 = vector.shape_cast %3 : vector<2x8x32xf32> to vector<16x32xf32>
    %c0_6 = arith.constant 0 : index
    %c0_7 = arith.constant 0 : index
    %c0_8 = arith.constant 0 : index
    %6 = vector.load %arg12[%c0_6, %c0_7, %c0_8] : memref<1x1x32xf32, #tpu.memory_space<vmem>>, vector<1x1x32xf32>
    %7 = vector.shape_cast %6 : vector<1x1x32xf32> to vector<1x32xf32>
    %c0_9 = arith.constant 0 : index
    %c0_10 = arith.constant 0 : index
    %c0_11 = arith.constant 0 : index
    %8 = vector.load %arg13[%c0_9, %c0_10, %c0_11] : memref<1x1x32xf32, #tpu.memory_space<vmem>>, vector<1x1x32xf32>
    %9 = vector.shape_cast %8 : vector<1x1x32xf32> to vector<1x32xf32>
    %cst = arith.constant dense<0.000000e+00> : vector<16xf32>
    %10 = vector.multi_reduction <add>, %5, %cst [1] : vector<16x32xf32> to vector<16xf32>
    %11 = vector.shape_cast %10 : vector<16xf32> to vector<16x1xf32>
    %cst_12 = arith.constant 3.200000e+01 : f32
    %12 = vector.broadcast %cst_12 : f32 to vector<16x1xf32>
    %13 = arith.divf %11, %12 : vector<16x1xf32>
    %14 = vector.broadcast %13 : vector<16x1xf32> to vector<16x32xf32>
    %15 = arith.subf %5, %14 : vector<16x32xf32>
    %16 = arith.mulf %15, %15 : vector<16x32xf32>
    %cst_13 = arith.constant dense<0.000000e+00> : vector<16xf32>
    %17 = vector.multi_reduction <add>, %16, %cst_13 [1] : vector<16x32xf32> to vector<16xf32>
    %18 = vector.shape_cast %17 : vector<16xf32> to vector<16x1xf32>
    %cst_14 = arith.constant 0.0322580636 : f32
    %19 = vector.broadcast %cst_14 : f32 to vector<16x1xf32>
    %20 = arith.mulf %18, %19 : vector<16x1xf32>
    %21 = math.sqrt %20 : vector<16x1xf32>
    %22 = vector.broadcast %7 : vector<1x32xf32> to vector<16x32xf32>
    %23 = arith.mulf %22, %15 : vector<16x32xf32>
    %cst_15 = arith.constant 9.99999997E-7 : f32
    %24 = vector.broadcast %cst_15 : f32 to vector<16x1xf32>
    %25 = arith.addf %21, %24 : vector<16x1xf32>
    %26 = tpu.reciprocal %25 {approx = true} : vector<16x1xf32> -> vector<16x1xf32>
    %27 = vector.broadcast %26 : vector<16x1xf32> to vector<16x32xf32>
    %28 = arith.mulf %23, %27 : vector<16x32xf32>
    %29 = vector.broadcast %9 : vector<1x32xf32> to vector<16x32xf32>
    %30 = arith.addf %28, %29 : vector<16x32xf32>
    %c0_16 = arith.constant 0 : index
    %c0_17 = arith.constant 0 : index
    %c0_18 = arith.constant 0 : index
    %31 = vector.load %arg4[%c0_16, %c0_17, %c0_18] : memref<1x32x32xf32, #tpu.memory_space<vmem>>, vector<1x32x32xf32>
    %32 = vector.shape_cast %31 : vector<1x32x32xf32> to vector<32x32xf32>
    %cst_19 = arith.constant dense<0.000000e+00> : vector<16x32xf32>
    %33 = tpu.matmul %30, %32, %cst_19 {dimension_numbers = #tpu.dot_dimension_numbers<[1], [0], [0], [1], [0, 0, 1, 1], [], []>} : vector<16x32xf32>, vector<32x32xf32>, vector<16x32xf32> -> vector<16x32xf32>
    %c0_20 = arith.constant 0 : index
    %c0_21 = arith.constant 0 : index
    %c0_22 = arith.constant 0 : index
    %34 = vector.load %arg5[%c0_20, %c0_21, %c0_22] : memref<1x1x32xf32, #tpu.memory_space<vmem>>, vector<1x1x32xf32>
    %35 = vector.shape_cast %34 : vector<1x1x32xf32> to vector<1x32xf32>
    %36 = vector.broadcast %35 : vector<1x32xf32> to vector<16x32xf32>
    %37 = arith.addf %33, %36 : vector<16x32xf32>
    %38 = vector.shape_cast %37 : vector<16x32xf32> to vector<2x8x32xf32>
    %c0_23 = arith.constant 0 : index
    %c0_24 = arith.constant 0 : index
    %c0_25 = arith.constant 0 : index
    %39 = vector.load %arg6[%c0_23, %c0_24, %c0_25] : memref<1x32x32xf32, #tpu.memory_space<vmem>>, vector<1x32x32xf32>
    %40 = vector.shape_cast %39 : vector<1x32x32xf32> to vector<32x32xf32>
    %cst_26 = arith.constant dense<0.000000e+00> : vector<16x32xf32>
    %41 = tpu.matmul %30, %40, %cst_26 {dimension_numbers = #tpu.dot_dimension_numbers<[1], [0], [0], [1], [0, 0, 1, 1], [], []>} : vector<16x32xf32>, vector<32x32xf32>, vector<16x32xf32> -> vector<16x32xf32>
    %c0_27 = arith.constant 0 : index
    %c0_28 = arith.constant 0 : index
    %c0_29 = arith.constant 0 : index
    %42 = vector.load %arg7[%c0_27, %c0_28, %c0_29] : memref<1x1x32xf32, #tpu.memory_space<vmem>>, vector<1x1x32xf32>
    %43 = vector.shape_cast %42 : vector<1x1x32xf32> to vector<1x32xf32>
    %44 = vector.broadcast %43 : vector<1x32xf32> to vector<16x32xf32>
    %45 = arith.addf %41, %44 : vector<16x32xf32>
    %46 = vector.shape_cast %45 : vector<16x32xf32> to vector<2x8x32xf32>
    %c0_30 = arith.constant 0 : index
    %c0_31 = arith.constant 0 : index
    %c0_32 = arith.constant 0 : index
    %47 = vector.load %arg8[%c0_30, %c0_31, %c0_32] : memref<1x32x32xf32, #tpu.memory_space<vmem>>, vector<1x32x32xf32>
    %48 = vector.shape_cast %47 : vector<1x32x32xf32> to vector<32x32xf32>
    %cst_33 = arith.constant dense<0.000000e+00> : vector<16x32xf32>
    %49 = tpu.matmul %30, %48, %cst_33 {dimension_numbers = #tpu.dot_dimension_numbers<[1], [0], [0], [1], [0, 0, 1, 1], [], []>} : vector<16x32xf32>, vector<32x32xf32>, vector<16x32xf32> -> vector<16x32xf32>
    %c0_34 = arith.constant 0 : index
    %c0_35 = arith.constant 0 : index
    %c0_36 = arith.constant 0 : index
    %50 = vector.load %arg9[%c0_34, %c0_35, %c0_36] : memref<1x1x32xf32, #tpu.memory_space<vmem>>, vector<1x1x32xf32>
    %51 = vector.shape_cast %50 : vector<1x1x32xf32> to vector<1x32xf32>
    %52 = vector.broadcast %51 : vector<1x32xf32> to vector<16x32xf32>
    %53 = arith.addf %49, %52 : vector<16x32xf32>
    %54 = vector.shape_cast %53 : vector<16x32xf32> to vector<2x8x32xf32>
    %55 = vector.extract_strided_slice %38 {offsets = [0, 0, 0], sizes = [2, 8, 8], strides = [1, 1, 1]} : vector<2x8x32xf32> to vector<2x8x8xf32>
    %56 = vector.extract_strided_slice %46 {offsets = [0, 0, 0], sizes = [2, 8, 8], strides = [1, 1, 1]} : vector<2x8x32xf32> to vector<2x8x8xf32>
    "tpu.trace_start"() <{level = 10 : i32, message = "bqd,bkd->bqk"}> : () -> ()
    %cst_37 = arith.constant dense<0.000000e+00> : vector<2x8x8xf32>
    %57 = tpu.matmul %55, %56, %cst_37 {dimension_numbers = #tpu.dot_dimension_numbers<[2], [2], [1], [1], [0, 0, 0, 1, 1, 1], [0], [0]>} : vector<2x8x8xf32>, vector<2x8x8xf32>, vector<2x8x8xf32> -> vector<2x8x8xf32>
    "tpu.trace_stop"() : () -> ()
    %cst_38 = arith.constant 0.353553385 : f32
    %58 = vector.broadcast %cst_38 : f32 to vector<2x8x8xf32>
    %59 = arith.mulf %57, %58 : vector<2x8x8xf32>
    %60 = vector.broadcast %4 : vector<2x1x8xf32> to vector<2x8x8xf32>
    %61 = arith.addf %59, %60 : vector<2x8x8xf32>
    %cst_39 = arith.constant dense<0xFF800000> : vector<2x8xf32>
    %62 = vector.multi_reduction <maximumf>, %61, %cst_39 [2] : vector<2x8x8xf32> to vector<2x8xf32>
    %63 = vector.shape_cast %62 : vector<2x8xf32> to vector<2x8x1xf32>
    %64 = vector.broadcast %63 : vector<2x8x1xf32> to vector<2x8x8xf32>
    %65 = arith.subf %61, %64 : vector<2x8x8xf32>
    %66 = math.exp %65 : vector<2x8x8xf32>
    %cst_40 = arith.constant dense<0.000000e+00> : vector<2x8xf32>
    %67 = vector.multi_reduction <add>, %66, %cst_40 [2] : vector<2x8x8xf32> to vector<2x8xf32>
    %68 = vector.shape_cast %67 : vector<2x8xf32> to vector<2x8x1xf32>
    %69 = tpu.reciprocal %68 {approx = true} : vector<2x8x1xf32> -> vector<2x8x1xf32>
    %70 = vector.broadcast %69 : vector<2x8x1xf32> to vector<2x8x8xf32>
    %71 = arith.mulf %66, %70 : vector<2x8x8xf32>
    %72 = vector.extract_strided_slice %54 {offsets = [0, 0, 0], sizes = [2, 8, 8], strides = [1, 1, 1]} : vector<2x8x32xf32> to vector<2x8x8xf32>
    "tpu.trace_start"() <{level = 10 : i32, message = "bqk,bkd->bqd"}> : () -> ()
    %cst_41 = arith.constant dense<0.000000e+00> : vector<2x8x8xf32>
    %73 = tpu.matmul %71, %72, %cst_41 {dimension_numbers = #tpu.dot_dimension_numbers<[2], [1], [1], [2], [0, 0, 0, 1, 1, 2], [0], [0]>} : vector<2x8x8xf32>, vector<2x8x8xf32>, vector<2x8x8xf32> -> vector<2x8x8xf32>
    "tpu.trace_stop"() : () -> ()
    %74 = vector.extract_strided_slice %38 {offsets = [0, 0, 8], sizes = [2, 8, 8], strides = [1, 1, 1]} : vector<2x8x32xf32> to vector<2x8x8xf32>
    %75 = vector.extract_strided_slice %46 {offsets = [0, 0, 8], sizes = [2, 8, 8], strides = [1, 1, 1]} : vector<2x8x32xf32> to vector<2x8x8xf32>
    "tpu.trace_start"() <{level = 10 : i32, message = "bqd,bkd->bqk"}> : () -> ()
    %cst_42 = arith.constant dense<0.000000e+00> : vector<2x8x8xf32>
    %76 = tpu.matmul %74, %75, %cst_42 {dimension_numbers = #tpu.dot_dimension_numbers<[2], [2], [1], [1], [0, 0, 0, 1, 1, 1], [0], [0]>} : vector<2x8x8xf32>, vector<2x8x8xf32>, vector<2x8x8xf32> -> vector<2x8x8xf32>
    "tpu.trace_stop"() : () -> ()
    %cst_43 = arith.constant 0.353553385 : f32
    %77 = vector.broadcast %cst_43 : f32 to vector<2x8x8xf32>
    %78 = arith.mulf %76, %77 : vector<2x8x8xf32>
    %79 = vector.broadcast %4 : vector<2x1x8xf32> to vector<2x8x8xf32>
    %80 = arith.addf %78, %79 : vector<2x8x8xf32>
    %cst_44 = arith.constant dense<0xFF800000> : vector<2x8xf32>
    %81 = vector.multi_reduction <maximumf>, %80, %cst_44 [2] : vector<2x8x8xf32> to vector<2x8xf32>
    %82 = vector.shape_cast %81 : vector<2x8xf32> to vector<2x8x1xf32>
    %83 = vector.broadcast %82 : vector<2x8x1xf32> to vector<2x8x8xf32>
    %84 = arith.subf %80, %83 : vector<2x8x8xf32>
    %85 = math.exp %84 : vector<2x8x8xf32>
    %cst_45 = arith.constant dense<0.000000e+00> : vector<2x8xf32>
    %86 = vector.multi_reduction <add>, %85, %cst_45 [2] : vector<2x8x8xf32> to vector<2x8xf32>
    %87 = vector.shape_cast %86 : vector<2x8xf32> to vector<2x8x1xf32>
    %88 = tpu.reciprocal %87 {approx = true} : vector<2x8x1xf32> -> vector<2x8x1xf32>
    %89 = vector.broadcast %88 : vector<2x8x1xf32> to vector<2x8x8xf32>
    %90 = arith.mulf %85, %89 : vector<2x8x8xf32>
    %91 = vector.extract_strided_slice %54 {offsets = [0, 0, 8], sizes = [2, 8, 8], strides = [1, 1, 1]} : vector<2x8x32xf32> to vector<2x8x8xf32>
    "tpu.trace_start"() <{level = 10 : i32, message = "bqk,bkd->bqd"}> : () -> ()
    %cst_46 = arith.constant dense<0.000000e+00> : vector<2x8x8xf32>
    %92 = tpu.matmul %90, %91, %cst_46 {dimension_numbers = #tpu.dot_dimension_numbers<[2], [1], [1], [2], [0, 0, 0, 1, 1, 2], [0], [0]>} : vector<2x8x8xf32>, vector<2x8x8xf32>, vector<2x8x8xf32> -> vector<2x8x8xf32>
    "tpu.trace_stop"() : () -> ()
    %93 = vector.extract_strided_slice %38 {offsets = [0, 0, 16], sizes = [2, 8, 8], strides = [1, 1, 1]} : vector<2x8x32xf32> to vector<2x8x8xf32>
    %94 = vector.extract_strided_slice %46 {offsets = [0, 0, 16], sizes = [2, 8, 8], strides = [1, 1, 1]} : vector<2x8x32xf32> to vector<2x8x8xf32>
    "tpu.trace_start"() <{level = 10 : i32, message = "bqd,bkd->bqk"}> : () -> ()
    %cst_47 = arith.constant dense<0.000000e+00> : vector<2x8x8xf32>
    %95 = tpu.matmul %93, %94, %cst_47 {dimension_numbers = #tpu.dot_dimension_numbers<[2], [2], [1], [1], [0, 0, 0, 1, 1, 1], [0], [0]>} : vector<2x8x8xf32>, vector<2x8x8xf32>, vector<2x8x8xf32> -> vector<2x8x8xf32>
    "tpu.trace_stop"() : () -> ()
    %cst_48 = arith.constant 0.353553385 : f32
    %96 = vector.broadcast %cst_48 : f32 to vector<2x8x8xf32>
    %97 = arith.mulf %95, %96 : vector<2x8x8xf32>
    %98 = vector.broadcast %4 : vector<2x1x8xf32> to vector<2x8x8xf32>
    %99 = arith.addf %97, %98 : vector<2x8x8xf32>
    %cst_49 = arith.constant dense<0xFF800000> : vector<2x8xf32>
    %100 = vector.multi_reduction <maximumf>, %99, %cst_49 [2] : vector<2x8x8xf32> to vector<2x8xf32>
    %101 = vector.shape_cast %100 : vector<2x8xf32> to vector<2x8x1xf32>
    %102 = vector.broadcast %101 : vector<2x8x1xf32> to vector<2x8x8xf32>
    %103 = arith.subf %99, %102 : vector<2x8x8xf32>
    %104 = math.exp %103 : vector<2x8x8xf32>
    %cst_50 = arith.constant dense<0.000000e+00> : vector<2x8xf32>
    %105 = vector.multi_reduction <add>, %104, %cst_50 [2] : vector<2x8x8xf32> to vector<2x8xf32>
    %106 = vector.shape_cast %105 : vector<2x8xf32> to vector<2x8x1xf32>
    %107 = tpu.reciprocal %106 {approx = true} : vector<2x8x1xf32> -> vector<2x8x1xf32>
    %108 = vector.broadcast %107 : vector<2x8x1xf32> to vector<2x8x8xf32>
    %109 = arith.mulf %104, %108 : vector<2x8x8xf32>
    %110 = vector.extract_strided_slice %54 {offsets = [0, 0, 16], sizes = [2, 8, 8], strides = [1, 1, 1]} : vector<2x8x32xf32> to vector<2x8x8xf32>
    "tpu.trace_start"() <{level = 10 : i32, message = "bqk,bkd->bqd"}> : () -> ()
    %cst_51 = arith.constant dense<0.000000e+00> : vector<2x8x8xf32>
    %111 = tpu.matmul %109, %110, %cst_51 {dimension_numbers = #tpu.dot_dimension_numbers<[2], [1], [1], [2], [0, 0, 0, 1, 1, 2], [0], [0]>} : vector<2x8x8xf32>, vector<2x8x8xf32>, vector<2x8x8xf32> -> vector<2x8x8xf32>
    "tpu.trace_stop"() : () -> ()
    %112 = vector.extract_strided_slice %38 {offsets = [0, 0, 24], sizes = [2, 8, 8], strides = [1, 1, 1]} : vector<2x8x32xf32> to vector<2x8x8xf32>
    %113 = vector.extract_strided_slice %46 {offsets = [0, 0, 24], sizes = [2, 8, 8], strides = [1, 1, 1]} : vector<2x8x32xf32> to vector<2x8x8xf32>
    "tpu.trace_start"() <{level = 10 : i32, message = "bqd,bkd->bqk"}> : () -> ()
    %cst_52 = arith.constant dense<0.000000e+00> : vector<2x8x8xf32>
    %114 = tpu.matmul %112, %113, %cst_52 {dimension_numbers = #tpu.dot_dimension_numbers<[2], [2], [1], [1], [0, 0, 0, 1, 1, 1], [0], [0]>} : vector<2x8x8xf32>, vector<2x8x8xf32>, vector<2x8x8xf32> -> vector<2x8x8xf32>
    "tpu.trace_stop"() : () -> ()
    %cst_53 = arith.constant 0.353553385 : f32
    %115 = vector.broadcast %cst_53 : f32 to vector<2x8x8xf32>
    %116 = arith.mulf %114, %115 : vector<2x8x8xf32>
    %117 = vector.broadcast %4 : vector<2x1x8xf32> to vector<2x8x8xf32>
    %118 = arith.addf %116, %117 : vector<2x8x8xf32>
    %cst_54 = arith.constant dense<0xFF800000> : vector<2x8xf32>
    %119 = vector.multi_reduction <maximumf>, %118, %cst_54 [2] : vector<2x8x8xf32> to vector<2x8xf32>
    %120 = vector.shape_cast %119 : vector<2x8xf32> to vector<2x8x1xf32>
    %121 = vector.broadcast %120 : vector<2x8x1xf32> to vector<2x8x8xf32>
    %122 = arith.subf %118, %121 : vector<2x8x8xf32>
    %123 = math.exp %122 : vector<2x8x8xf32>
    %cst_55 = arith.constant dense<0.000000e+00> : vector<2x8xf32>
    %124 = vector.multi_reduction <add>, %123, %cst_55 [2] : vector<2x8x8xf32> to vector<2x8xf32>
    %125 = vector.shape_cast %124 : vector<2x8xf32> to vector<2x8x1xf32>
    %126 = tpu.reciprocal %125 {approx = true} : vector<2x8x1xf32> -> vector<2x8x1xf32>
    %127 = vector.broadcast %126 : vector<2x8x1xf32> to vector<2x8x8xf32>
    %128 = arith.mulf %123, %127 : vector<2x8x8xf32>
    %129 = vector.extract_strided_slice %54 {offsets = [0, 0, 24], sizes = [2, 8, 8], strides = [1, 1, 1]} : vector<2x8x32xf32> to vector<2x8x8xf32>
    "tpu.trace_start"() <{level = 10 : i32, message = "bqk,bkd->bqd"}> : () -> ()
    %cst_56 = arith.constant dense<0.000000e+00> : vector<2x8x8xf32>
    %130 = tpu.matmul %128, %129, %cst_56 {dimension_numbers = #tpu.dot_dimension_numbers<[2], [1], [1], [2], [0, 0, 0, 1, 1, 2], [0], [0]>} : vector<2x8x8xf32>, vector<2x8x8xf32>, vector<2x8x8xf32> -> vector<2x8x8xf32>
    "tpu.trace_stop"() : () -> ()
    %131 = tpu.concatenate %73, %92, %111, %130 in 2 : vector<2x8x8xf32>, vector<2x8x8xf32>, vector<2x8x8xf32>, vector<2x8x8xf32> -> vector<2x8x32xf32>
    %132 = vector.shape_cast %131 : vector<2x8x32xf32> to vector<16x32xf32>
    %c0_57 = arith.constant 0 : index
    %c0_58 = arith.constant 0 : index
    %c0_59 = arith.constant 0 : index
    %133 = vector.load %arg10[%c0_57, %c0_58, %c0_59] : memref<1x32x32xf32, #tpu.memory_space<vmem>>, vector<1x32x32xf32>
    %134 = vector.shape_cast %133 : vector<1x32x32xf32> to vector<32x32xf32>
    %cst_60 = arith.constant dense<0.000000e+00> : vector<16x32xf32>
    %135 = tpu.matmul %132, %134, %cst_60 {dimension_numbers = #tpu.dot_dimension_numbers<[1], [0], [0], [1], [0, 0, 1, 1], [], []>} : vector<16x32xf32>, vector<32x32xf32>, vector<16x32xf32> -> vector<16x32xf32>
    %c0_61 = arith.constant 0 : index
    %c0_62 = arith.constant 0 : index
    %c0_63 = arith.constant 0 : index
    %136 = vector.load %arg11[%c0_61, %c0_62, %c0_63] : memref<1x1x32xf32, #tpu.memory_space<vmem>>, vector<1x1x32xf32>
    %137 = vector.shape_cast %136 : vector<1x1x32xf32> to vector<1x32xf32>
    %138 = vector.broadcast %137 : vector<1x32xf32> to vector<16x32xf32>
    %139 = arith.addf %135, %138 : vector<16x32xf32>
    %140 = vector.shape_cast %139 : vector<16x32xf32> to vector<2x8x32xf32>
    %141 = arith.addf %3, %140 : vector<2x8x32xf32>
    %142 = vector.shape_cast %141 : vector<2x8x32xf32> to vector<16x32xf32>
    %c0_64 = arith.constant 0 : index
    %c0_65 = arith.constant 0 : index
    %c0_66 = arith.constant 0 : index
    %143 = vector.load %arg18[%c0_64, %c0_65, %c0_66] : memref<1x1x32xf32, #tpu.memory_space<vmem>>, vector<1x1x32xf32>
    %144 = vector.shape_cast %143 : vector<1x1x32xf32> to vector<1x32xf32>
    %c0_67 = arith.constant 0 : index
    %c0_68 = arith.constant 0 : index
    %c0_69 = arith.constant 0 : index
    %145 = vector.load %arg19[%c0_67, %c0_68, %c0_69] : memref<1x1x32xf32, #tpu.memory_space<vmem>>, vector<1x1x32xf32>
    %146 = vector.shape_cast %145 : vector<1x1x32xf32> to vector<1x32xf32>
    %cst_70 = arith.constant dense<0.000000e+00> : vector<16xf32>
    %147 = vector.multi_reduction <add>, %142, %cst_70 [1] : vector<16x32xf32> to vector<16xf32>
    %148 = vector.shape_cast %147 : vector<16xf32> to vector<16x1xf32>
    %cst_71 = arith.constant 3.200000e+01 : f32
    %149 = vector.broadcast %cst_71 : f32 to vector<16x1xf32>
    %150 = arith.divf %148, %149 : vector<16x1xf32>
    %151 = vector.broadcast %150 : vector<16x1xf32> to vector<16x32xf32>
    %152 = arith.subf %142, %151 : vector<16x32xf32>
    %153 = arith.mulf %152, %152 : vector<16x32xf32>
    %cst_72 = arith.constant dense<0.000000e+00> : vector<16xf32>
    %154 = vector.multi_reduction <add>, %153, %cst_72 [1] : vector<16x32xf32> to vector<16xf32>
    %155 = vector.shape_cast %154 : vector<16xf32> to vector<16x1xf32>
    %cst_73 = arith.constant 0.0322580636 : f32
    %156 = vector.broadcast %cst_73 : f32 to vector<16x1xf32>
    %157 = arith.mulf %155, %156 : vector<16x1xf32>
    %158 = math.sqrt %157 : vector<16x1xf32>
    %159 = vector.broadcast %144 : vector<1x32xf32> to vector<16x32xf32>
    %160 = arith.mulf %159, %152 : vector<16x32xf32>
    %cst_74 = arith.constant 9.99999997E-7 : f32
    %161 = vector.broadcast %cst_74 : f32 to vector<16x1xf32>
    %162 = arith.addf %158, %161 : vector<16x1xf32>
    %163 = tpu.reciprocal %162 {approx = true} : vector<16x1xf32> -> vector<16x1xf32>
    %164 = vector.broadcast %163 : vector<16x1xf32> to vector<16x32xf32>
    %165 = arith.mulf %160, %164 : vector<16x32xf32>
    %166 = vector.broadcast %146 : vector<1x32xf32> to vector<16x32xf32>
    %167 = arith.addf %165, %166 : vector<16x32xf32>
    %c0_75 = arith.constant 0 : index
    %c0_76 = arith.constant 0 : index
    %c0_77 = arith.constant 0 : index
    %168 = vector.load %arg14[%c0_75, %c0_76, %c0_77] : memref<1x32x64xf32, #tpu.memory_space<vmem>>, vector<1x32x64xf32>
    %169 = vector.shape_cast %168 : vector<1x32x64xf32> to vector<32x64xf32>
    %cst_78 = arith.constant dense<0.000000e+00> : vector<16x64xf32>
    %170 = tpu.matmul %167, %169, %cst_78 {dimension_numbers = #tpu.dot_dimension_numbers<[1], [0], [0], [1], [0, 0, 1, 1], [], []>} : vector<16x32xf32>, vector<32x64xf32>, vector<16x64xf32> -> vector<16x64xf32>
    %c0_79 = arith.constant 0 : index
    %c0_80 = arith.constant 0 : index
    %c0_81 = arith.constant 0 : index
    %171 = vector.load %arg15[%c0_79, %c0_80, %c0_81] : memref<1x1x64xf32, #tpu.memory_space<vmem>>, vector<1x1x64xf32>
    %172 = vector.shape_cast %171 : vector<1x1x64xf32> to vector<1x64xf32>
    %173 = vector.broadcast %172 : vector<1x64xf32> to vector<16x64xf32>
    %174 = arith.addf %170, %173 : vector<16x64xf32>
    %cst_82 = arith.constant 0.000000e+00 : f32
    %175 = vector.broadcast %cst_82 : f32 to vector<16x64xf32>
    %176 = arith.maximumf %174, %175 : vector<16x64xf32>
    %c0_83 = arith.constant 0 : index
    %c0_84 = arith.constant 0 : index
    %c0_85 = arith.constant 0 : index
    %177 = vector.load %arg16[%c0_83, %c0_84, %c0_85] : memref<1x64x32xf32, #tpu.memory_space<vmem>>, vector<1x64x32xf32>
    %178 = vector.shape_cast %177 : vector<1x64x32xf32> to vector<64x32xf32>
    %cst_86 = arith.constant dense<0.000000e+00> : vector<16x32xf32>
    %179 = tpu.matmul %176, %178, %cst_86 {dimension_numbers = #tpu.dot_dimension_numbers<[1], [0], [0], [1], [0, 0, 1, 1], [], []>} : vector<16x64xf32>, vector<64x32xf32>, vector<16x32xf32> -> vector<16x32xf32>
    %c0_87 = arith.constant 0 : index
    %c0_88 = arith.constant 0 : index
    %c0_89 = arith.constant 0 : index
    %180 = vector.load %arg17[%c0_87, %c0_88, %c0_89] : memref<1x1x32xf32, #tpu.memory_space<vmem>>, vector<1x1x32xf32>
    %181 = vector.shape_cast %180 : vector<1x1x32xf32> to vector<1x32xf32>
    %182 = vector.broadcast %181 : vector<1x32xf32> to vector<16x32xf32>
    %183 = arith.addf %179, %182 : vector<16x32xf32>
    %184 = vector.shape_cast %183 : vector<16x32xf32> to vector<2x8x32xf32>
    %185 = arith.addf %141, %184 : vector<2x8x32xf32>
    %c0_90 = arith.constant 0 : index
    %c0_91 = arith.constant 0 : index
    %c0_92 = arith.constant 0 : index
    %186 = vector.load %arg25[%c0_90, %c0_91, %c0_92] : memref<2x8x32xf32, #tpu.memory_space<vmem>>, vector<2x8x32xf32>
    tpu.vector_store %arg25[%c0_90, %c0_91, %c0_92], %185 {strides = array<i32>} : memref<2x8x32xf32, #tpu.memory_space<vmem>>, vector<2x8x32xf32>,
    %c1_i32 = arith.constant 1 : i32
    %187 = arith.cmpi eq, %arg1, %c1_i32 : i32
    %188 = arith.extui %187 : i1 to i32
    %c0_i32_93 = arith.constant 0 : i32
    %189 = arith.cmpi ne, %188, %c0_i32_93 : i32
    scf.if %189 {
      %190 = vector.extract_strided_slice %185 {offsets = [0, 7, 0], sizes = [2, 1, 32], strides = [1, 1, 1]} : vector<2x8x32xf32> to vector<2x1x32xf32>
      %191 = vector.shape_cast %190 : vector<2x1x32xf32> to vector<2x32xf32>
      %c0_94 = arith.constant 0 : index
      %c0_95 = arith.constant 0 : index
      %192 = vector.load %arg20[%c0_94, %c0_95] : memref<1x32xf32, #tpu.memory_space<vmem>>, vector<1x32xf32>
      %c0_96 = arith.constant 0 : index
      %c0_97 = arith.constant 0 : index
      %193 = vector.load %arg21[%c0_96, %c0_97] : memref<1x32xf32, #tpu.memory_space<vmem>>, vector<1x32xf32>
      %cst_98 = arith.constant dense<0.000000e+00> : vector<2xf32>
      %194 = vector.multi_reduction <add>, %191, %cst_98 [1] : vector<2x32xf32> to vector<2xf32>
      %195 = vector.shape_cast %194 : vector<2xf32> to vector<2x1xf32>
      %cst_99 = arith.constant 3.200000e+01 : f32
      %196 = vector.broadcast %cst_99 : f32 to vector<2x1xf32>
      %197 = arith.divf %195, %196 : vector<2x1xf32>
      %198 = vector.broadcast %197 : vector<2x1xf32> to vector<2x32xf32>
      %199 = arith.subf %191, %198 : vector<2x32xf32>
      %200 = arith.mulf %199, %199 : vector<2x32xf32>
      %cst_100 = arith.constant dense<0.000000e+00> : vector<2xf32>
      %201 = vector.multi_reduction <add>, %200, %cst_100 [1] : vector<2x32xf32> to vector<2xf32>
      %202 = vector.shape_cast %201 : vector<2xf32> to vector<2x1xf32>
      %cst_101 = arith.constant 0.0322580636 : f32
      %203 = vector.broadcast %cst_101 : f32 to vector<2x1xf32>
      %204 = arith.mulf %202, %203 : vector<2x1xf32>
      %205 = math.sqrt %204 : vector<2x1xf32>
      %206 = vector.broadcast %192 : vector<1x32xf32> to vector<2x32xf32>
      %207 = arith.mulf %206, %199 : vector<2x32xf32>
      %cst_102 = arith.constant 9.99999997E-7 : f32
      %208 = vector.broadcast %cst_102 : f32 to vector<2x1xf32>
      %209 = arith.addf %205, %208 : vector<2x1xf32>
      %210 = tpu.reciprocal %209 {approx = true} : vector<2x1xf32> -> vector<2x1xf32>
      %211 = vector.broadcast %210 : vector<2x1xf32> to vector<2x32xf32>
      %212 = arith.mulf %207, %211 : vector<2x32xf32>
      %213 = vector.broadcast %193 : vector<1x32xf32> to vector<2x32xf32>
      %214 = arith.addf %212, %213 : vector<2x32xf32>
      %c0_103 = arith.constant 0 : index
      %c0_104 = arith.constant 0 : index
      %215 = vector.load %arg22[%c0_103, %c0_104] : memref<32x2xf32, #tpu.memory_space<vmem>>, vector<32x2xf32>
      %cst_105 = arith.constant dense<0.000000e+00> : vector<2x2xf32>
      %216 = tpu.matmul %214, %215, %cst_105 {dimension_numbers = #tpu.dot_dimension_numbers<[1], [0], [0], [1], [0, 0, 1, 1], [], []>} : vector<2x32xf32>, vector<32x2xf32>, vector<2x2xf32> -> vector<2x2xf32>
      %c0_106 = arith.constant 0 : index
      %c0_107 = arith.constant 0 : index
      %217 = vector.load %arg23[%c0_106, %c0_107] : memref<1x2xf32, #tpu.memory_space<vmem>>, vector<1x2xf32>
      %218 = vector.broadcast %217 : vector<1x2xf32> to vector<2x2xf32>
      %219 = arith.addf %216, %218 : vector<2x2xf32>
      %c0_108 = arith.constant 0 : index
      %c0_109 = arith.constant 0 : index
      %220 = vector.load %arg24[%c0_108, %c0_109] : memref<2x2xf32, #tpu.memory_space<vmem>>, vector<2x2xf32>
      tpu.vector_store %arg24[%c0_108, %c0_109], %219 {strides = array<i32>} : memref<2x2xf32, #tpu.memory_space<vmem>>, vector<2x2xf32>,
    } else {
    }
    return
  }
  func.func @transform_0(%arg0: i32, %arg1: i32) -> (i32, i32, i32) {
    %c0_i32 = arith.constant 0 : i32
    %c0_i32_0 = arith.constant 0 : i32
    %c0_i32_1 = arith.constant 0 : i32
    return %arg0, %c0_i32, %c0_i32_0 : i32, i32, i32
  }
  func.func @transform_1(%arg0: i32, %arg1: i32) -> (i32, i32, i32) {
    %c0_i32 = arith.constant 0 : i32
    %c0_i32_0 = arith.constant 0 : i32
    %c0_i32_1 = arith.constant 0 : i32
    return %arg0, %c0_i32, %c0_i32_0 : i32, i32, i32
  }
  func.func @transform_2(%arg0: i32, %arg1: i32) -> (i32, i32, i32) {
    %c0_i32 = arith.constant 0 : i32
    %c0_i32_0 = arith.constant 0 : i32
    %c0_i32_1 = arith.constant 0 : i32
    return %arg1, %c0_i32, %c0_i32_0 : i32, i32, i32
  }
  func.func @transform_3(%arg0: i32, %arg1: i32) -> (i32, i32, i32) {
    %c0_i32 = arith.constant 0 : i32
    %c0_i32_0 = arith.constant 0 : i32
    %c0_i32_1 = arith.constant 0 : i32
    return %arg1, %c0_i32, %c0_i32_0 : i32, i32, i32
  }
  func.func @transform_4(%arg0: i32, %arg1: i32) -> (i32, i32, i32) {
    %c0_i32 = arith.constant 0 : i32
    %c0_i32_0 = arith.constant 0 : i32
    %c0_i32_1 = arith.constant 0 : i32
    return %arg1, %c0_i32, %c0_i32_0 : i32, i32, i32
  }
  func.func @transform_5(%arg0: i32, %arg1: i32) -> (i32, i32, i32) {
    %c0_i32 = arith.constant 0 : i32
    %c0_i32_0 = arith.constant 0 : i32
    %c0_i32_1 = arith.constant 0 : i32
    return %arg1, %c0_i32, %c0_i32_0 : i32, i32, i32
  }
  func.func @transform_6(%arg0: i32, %arg1: i32) -> (i32, i32, i32) {
    %c0_i32 = arith.constant 0 : i32
    %c0_i32_0 = arith.constant 0 : i32
    %c0_i32_1 = arith.constant 0 : i32
    return %arg1, %c0_i32, %c0_i32_0 : i32, i32, i32
  }
  func.func @transform_7(%arg0: i32, %arg1: i32) -> (i32, i32, i32) {
    %c0_i32 = arith.constant 0 : i32
    %c0_i32_0 = arith.constant 0 : i32
    %c0_i32_1 = arith.constant 0 : i32
    return %arg1, %c0_i32, %c0_i32_0 : i32, i32, i32
  }
  func.func @transform_8(%arg0: i32, %arg1: i32) -> (i32, i32, i32) {
    %c0_i32 = arith.constant 0 : i32
    %c0_i32_0 = arith.constant 0 : i32
    %c0_i32_1 = arith.constant 0 : i32
    return %arg1, %c0_i32, %c0_i32_0 : i32, i32, i32
  }
  func.func @transform_9(%arg0: i32, %arg1: i32) -> (i32, i32, i32) {
    %c0_i32 = arith.constant 0 : i32
    %c0_i32_0 = arith.constant 0 : i32
    %c0_i32_1 = arith.constant 0 : i32
    return %arg1, %c0_i32, %c0_i32_0 : i32, i32, i32
  }
  func.func @transform_10(%arg0: i32, %arg1: i32) -> (i32, i32, i32) {
    %c0_i32 = arith.constant 0 : i32
    %c0_i32_0 = arith.constant 0 : i32
    %c0_i32_1 = arith.constant 0 : i32
    return %arg1, %c0_i32, %c0_i32_0 : i32, i32, i32
  }
  func.func @transform_11(%arg0: i32, %arg1: i32) -> (i32, i32, i32) {
    %c0_i32 = arith.constant 0 : i32
    %c0_i32_0 = arith.constant 0 : i32
    %c0_i32_1 = arith.constant 0 : i32
    return %arg1, %c0_i32, %c0_i32_0 : i32, i32, i32
  }
  func.func @transform_12(%arg0: i32, %arg1: i32) -> (i32, i32, i32) {
    %c0_i32 = arith.constant 0 : i32
    %c0_i32_0 = arith.constant 0 : i32
    %c0_i32_1 = arith.constant 0 : i32
    return %arg1, %c0_i32, %c0_i32_0 : i32, i32, i32
  }
  func.func @transform_13(%arg0: i32, %arg1: i32) -> (i32, i32, i32) {
    %c0_i32 = arith.constant 0 : i32
    %c0_i32_0 = arith.constant 0 : i32
    %c0_i32_1 = arith.constant 0 : i32
    return %arg1, %c0_i32, %c0_i32_0 : i32, i32, i32
  }
  func.func @transform_14(%arg0: i32, %arg1: i32) -> (i32, i32, i32) {
    %c0_i32 = arith.constant 0 : i32
    %c0_i32_0 = arith.constant 0 : i32
    %c0_i32_1 = arith.constant 0 : i32
    return %arg1, %c0_i32, %c0_i32_0 : i32, i32, i32
  }
  func.func @transform_15(%arg0: i32, %arg1: i32) -> (i32, i32, i32) {
    %c0_i32 = arith.constant 0 : i32
    %c0_i32_0 = arith.constant 0 : i32
    %c0_i32_1 = arith.constant 0 : i32
    return %arg1, %c0_i32, %c0_i32_0 : i32, i32, i32
  }
  func.func @transform_16(%arg0: i32, %arg1: i32) -> (i32, i32, i32) {
    %c0_i32 = arith.constant 0 : i32
    %c0_i32_0 = arith.constant 0 : i32
    %c0_i32_1 = arith.constant 0 : i32
    return %arg1, %c0_i32, %c0_i32_0 : i32, i32, i32
  }
  func.func @transform_17(%arg0: i32, %arg1: i32) -> (i32, i32, i32) {
    %c0_i32 = arith.constant 0 : i32
    %c0_i32_0 = arith.constant 0 : i32
    %c0_i32_1 = arith.constant 0 : i32
    return %arg1, %c0_i32, %c0_i32_0 : i32, i32, i32
  }
  func.func @transform_18(%arg0: i32, %arg1: i32) -> (i32, i32) {
    %c0_i32 = arith.constant 0 : i32
    %c0_i32_0 = arith.constant 0 : i32
    %c0_i32_1 = arith.constant 0 : i32
    return %c0_i32, %c0_i32_0 : i32, i32
  }
  func.func @transform_19(%arg0: i32, %arg1: i32) -> (i32, i32) {
    %c0_i32 = arith.constant 0 : i32
    %c0_i32_0 = arith.constant 0 : i32
    %c0_i32_1 = arith.constant 0 : i32
    return %c0_i32, %c0_i32_0 : i32, i32
  }
  func.func @transform_20(%arg0: i32, %arg1: i32) -> (i32, i32) {
    %c0_i32 = arith.constant 0 : i32
    %c0_i32_0 = arith.constant 0 : i32
    %c0_i32_1 = arith.constant 0 : i32
    return %c0_i32, %c0_i32_0 : i32, i32
  }
  func.func @transform_21(%arg0: i32, %arg1: i32) -> (i32, i32) {
    %c0_i32 = arith.constant 0 : i32
    %c0_i32_0 = arith.constant 0 : i32
    %c0_i32_1 = arith.constant 0 : i32
    return %c0_i32, %c0_i32_0 : i32, i32
  }
  func.func @transform_22(%arg0: i32, %arg1: i32) -> (i32, i32) {
    %c0_i32 = arith.constant 0 : i32
    %c0_i32_0 = arith.constant 0 : i32
    return %arg0, %c0_i32 : i32, i32
  }
}

</mosaic_0001>

<bundles_post_ra>
// kernel: tpu_custom_call.1
= control target key start
LH: loop header
LB: loop body
LE: loop exit
PB: predicated region body
PF: predicated region fallthrough
CT: control target
= control target key end

     0   :  { %s3262_s0 = inlined_call_operand.vmem [shape: f32[2,8,32], index: 0, kind: input, shape index: {}]   ;;  %s3263_s1 = inlined_call_operand.vmem [shape: f32[2,1,8], index: 1, kind: input, shape index: {}]   ;;  %s3264_s2 = inlined_call_operand.vmem [shape: f32[2,32,32], index: 2, kind: input, shape index: {}]   ;;  %s3265_s3 = inlined_call_operand.vmem [shape: f32[2,1,32], index: 3, kind: input, shape index: {}]   ;;  %s3266_s4 = inlined_call_operand.vmem [shape: f32[2,32,32], index: 4, kind: input, shape index: {}]   ;;  %s3267_s5 = inlined_call_operand.vmem [shape: f32[2,1,32], index: 5, kind: input, shape index: {}]   ;;  %s3268_s6 = inlined_call_operand.vmem [shape: f32[2,32,32], index: 6, kind: input, shape index: {}]   ;;  %s3269_s7 = inlined_call_operand.vmem [shape: f32[2,1,32], index: 7, kind: input, shape index: {}]   ;;  %s3270_s8 = inlined_call_operand.hbm [shape: f32[2,32,32], index: 8, kind: input, shape index: {}]   ;;  %s3271_s9 = inlined_call_operand.vmem [shape: f32[2,1,32], index: 9, kind: input, shape index: {}]   ;;  %s3272_s10 = inlined_call_operand.vmem [shape: f32[2,1,32], index: 10, kind: input, shape index: {}]   ;;  %s3273_s11 = inlined_call_operand.vmem [shape: f32[2,1,32], index: 11, kind: input, shape index: {}]   ;;  %s3274_s12 = inlined_call_operand.hbm [shape: f32[2,32,64], index: 12, kind: input, shape index: {}]   ;;  %s3275_s13 = inlined_call_operand.vmem [shape: f32[2,1,64], index: 13, kind: input, shape index: {}]   ;;  %s3276_s14 = inlined_call_operand.vmem [shape: f32[2,64,32], index: 14, kind: input, shape index: {}]   ;;  %s3277_s15 = inlined_call_operand.vmem [shape: f32[2,1,32], index: 15, kind: input, shape index: {}]   ;;  %s3278_s16 = inlined_call_operand.vmem [shape: f32[2,1,32], index: 16, kind: input, shape index: {}]   ;;  %s3279_s17 = inlined_call_operand.vmem [shape: f32[2,1,32], index: 17, kind: input, shape index: {}]   ;;  %s3280_s18 = inlined_call_operand.vmem [shape: f32[1,32], index: 18, kind: input, shape index: {}]   ;;  %s3281_s19 = inlined_call_operand.vmem [shape: f32[1,32], index: 19, kind: input, shape index: {}]   ;;  %s3282_s20 = inlined_call_operand.vmem [shape: f32[32,2], index: 20, kind: input, shape index: {}]   ;;  %s3283_s21 = inlined_call_operand.vmem [shape: f32[1,2], index: 21, kind: input, shape index: {}]   ;;  %s3284_s22 = inlined_call_operand.hbm [shape: f32[2,2], index: 22, kind: output, shape index: {}]  }
   0x1   :  { %3296 = sst [smem:[#allocation20_spill]] %s3262_s0 }
   0x2   :  { %3297 = sst [smem:[#allocation21_spill]] %s3263_s1 }
   0x3   :  { %3298 = sst [smem:[#allocation22_spill]] %s3264_s2 }
   0x4   :  { %3299 = sst [smem:[#allocation23_spill]] %s3265_s3 }
   0x5   :  { %3300 = sst [smem:[#allocation24_spill]] %s3266_s4 }
   0x6   :  { %3301 = sst [smem:[#allocation25_spill]] %s3267_s5 }
   0x7   :  { %3302 = sst [smem:[#allocation26_spill]] %s3268_s6 }
   0x8   :  { %3303 = sst [smem:[#allocation27_spill]] %s3270_s8 }
   0x9   :  { %3304 = sst [smem:[#allocation28_spill]] %s3274_s12 }
   0xa   :  { %3305 = sst [smem:[#allocation29_spill]] %s3279_s17 }
   0xb   :  { %3306 = sst [smem:[#allocation30_spill]] %s3280_s18 }
   0xc   :  { %3307 = sst [smem:[#allocation31_spill]] %s3281_s19 }
   0xd   :  { %3308 = sst [smem:[#allocation32_spill]] %s3282_s20 }
   0xe   :  { %3309 = sst [smem:[#allocation33_spill]] %s3283_s21 }
   0xf   :  { %3310 = sst [smem:[#allocation34_spill]] %s3284_s22 }
  0x10   :  { %27 = vsyncpa [#allocation4], 0 }
  0x11   :  { %29 = vsyncpa [#allocation4 + $0x1], 0 }
  0x12   :  { %30 = vsyncpa [#allocation7], 0 }
  0x13   :  { %32 = vsyncpa [#allocation7 + $0x1], 0 }
  0x14   :  { %33 = vsyncpa [#allocation5], 0  ;;  %s2832_s3 = smov 0   ;;  %s2834_s28 = smov 0  }
  0x15   :  { %s2836_s29 = smov 0   ;;  %s2838_s30 = smov 0  }
  0x16   :  { %s2840_s4 = smov 0   ;;  %s2842_s0 = smov 0  }
  0x17 LB: > { %3311 = sst [smem:[#allocation12_spill]] %s2689_s28  ;;  %s3288_s23 = sadd.s32 4294967295, %s2705_s0   ;;  %s2705_s0 = sphi %s2842_s0, %s39_s0   ;;  %s2701_s4 = sphi %s2840_s4, %s3354_s4   ;;  %s2697_s30 = sphi %s2838_s30, %s3353_s30   ;;  %s2693_s29 = sphi %s2836_s29, %s3352_s29   ;;  %s2689_s28 = sphi %s2834_s28, %s3351_s28   ;;  %s2685_s3 = sphi %s2832_s3, %s3350_s3  }
  0x18   : > { %3312 = sst [smem:[#allocation13_spill]] %s2693_s29  ;;  %s48_s1 = sadd.s32 1, %s2701_s4 }
  0x19   : > { %3313 = sst [smem:[#allocation14_spill]] %s2701_s4  ;;  %p49_p0 = scmp.ge.s32.totalorder %s48_s1, 2 }
  0x1a   : > { %3314 = sst [smem:[#allocation15_spill]] %s2705_s0  ;;  %s266_s5 = sadd.s32 1, %s2693_s29 }
  0x1b   : > { %p273_p1 = scmp.ne.s32.totalorder %s2693_s29, %s2689_s28  ;;  %p274_p2 = scmp.eq.s32.totalorder %s2705_s0, 0 }
  0x1c   : > { %s3356_s1 = smov (%p49_p0, %s48_s1), 0  ;;  %p279_p4 = scmp.ne.s32.totalorder %s2689_s28, %s2685_s3 }
  0x1d   : > { %3315 = sst [smem:[#allocation16_spill]] %s3356_s1  ;;  %p2868_p3 = por %p274_p2, %p273_p1 }
  0x1e   : > { %s263_s6 = ssub.s32 %s2701_s4, %s3356_s1  ;;  %p280_p5 = scmp.eq.s32.totalorder %s3288_s23, 0 }
  0x1f   : > { %p264_p6 = scmp.eq.s32.totalorder %s263_s6, 0  ;;  %p2420_p8 = scmp.lt.s32.totalorder %s2705_s0, 2 }
  0x20   : > { %p2877_p7 = por %p280_p5, %p279_p4  ;;  %s2886_s2 = sand.u32 1, %s2693_s29  }
  0x21   : > { %s2883_s26 = scalar_select %p264_p6, %s2693_s29, %s266_s5  }
  0x22   : > { %s2399_s27 = sshll.u32 %s2701_s4, 5  ;;  %s2339_s3 = sshll.u32 %s2886_s2, 5 }
  0x23   : > { %3318 = sst [smem:[#allocation17_spill]] %s2883_s26  ;;  %s722_s19 = scalar_lea.vmem [#allocation3], %s2339_s3 }
  0x24   : > { %s3319_s8 = sld [smem:[#allocation27_spill]]  ;;  %s730_s6 = sshll.u32 %s722_s19, 4  ;;  %s731_s6 = int_to_ptr.vmem [resolvable:$true] %s730_s6 }
  0x25   : > { %p2895_p9 = pnand %p2420_p8, %p2868_p3  ;;  %p2345_p10 = scmp.ge.s32.totalorder %s2705_s0, 1 }
  0x26   : > { %p810_p11 = scmp.lt.s32.totalorder %s2705_s0, 3  ;;  %s719_s4 = scalar_lea.sflag [#allocation4], %s2886_s2 }
  0x27   : > { %s2707_s26 = smov 128   ;;  %s2708_s29 = smov 8  }
  0x28   : > { %p811_p12 = pnand %p2345_p10, %p810_p11  ;;  %s3321_s12 = sld [smem:[#allocation28_spill]] }
  0x29   : > { %s762_s24 = scalar_lea.vmem [#allocation6], %s2339_s3  ;;  %s759_s18 = scalar_lea.sflag [#allocation7], %s2886_s2 }
  0x2a   : > { %s727_s21 = scalar_lea.hbm %s3319_s8, %s2399_s27  ;;  %s770_s8 = sshll.u32 %s762_s24, 4  ;;  %s771_s8 = int_to_ptr.vmem [resolvable:$true] %s770_s8 }
  0x2b   : > { %s728_s23 = sshll.u32 %s727_s21, 4  ;;  %s729_s23 = int_to_ptr.hbm [resolvable:$true] %s728_s23 }
  0x2c   : > { %2416 = dma.hbm_to_vmem [thread:$0]  (!%p2895_p9), %s729_s23, 512, %s731_s6, %s719_s4, %s2707_s26, %s2707_s26, %s2708_s29  }
  0x2d   : > { %814 = sbr.rel (%p811_p12) target bundleno = 2396 (0x95c), region = 108 }
  0x2e   : > { %s767_s22 = scalar_lea.hbm %s3321_s12, %s2399_s27 }
  0x2f   : > { %s768_s1 = sshll.u32 %s767_s22, 4  ;;  %s769_s1 = int_to_ptr.hbm [resolvable:$true] %s768_s1 }
  0x30   : > { %2419 = dma.hbm_to_vmem [thread:$0]  (!%p2895_p9), %s769_s1, 512, %s771_s8, %s759_s18, %s2707_s26, %s2707_s26, %s2708_s29  }
  0x32   : > { %s816_s0 = sand.u32 1, %s2689_s28  }
  0x33   : > { %s2346_s20 = sshll.u32 %s816_s0, 5  ;;  %s817_s17 = scalar_lea.sflag [#allocation4], %s816_s0 }
  0x34   : > { %s2911_s4 = scalar_lea.vmem [#allocation3], %s2346_s20 }
  0x35   : > { %3322 = sst [smem:[#allocation18_spill]] %s2911_s4 }
  0x36   : > { %2672 = dma.done.wait (%p2877_p7), %s817_s17, 512  }
  0x37   : > { %2674 = vsyncadd (%p2877_p7), %s817_s17, 4294966784  ;;  %s827_s23 = scalar_lea.sflag [#allocation7], %s816_s0  ;;  %s2917_s27 = scalar_lea.vmem [#allocation6], %s2346_s20 }
  0x38   : > { %3323 = sst [smem:[#allocation19_spill]] %s2917_s27 }
  0x39   : > { %2676 = dma.done.wait (%p2877_p7), %s827_s23, 512  }
  0x3a   : > { %2678 = vsyncadd (%p2877_p7), %s827_s23, 4294966784  ;;  %p962_p13 = scmp.lt.s32.totalorder %s2697_s30, 1  ;;  %s3325_s2 = sld [smem:[#allocation22_spill]] }
  0x3b   : > { %s3326_s21 = sld [smem:[#allocation24_spill]]  ;;  %p2356_p0 = scmp.ne.s32.totalorder %s2697_s30, 0 }
  0x3c   : > { %s2925_s8 = scalar_select %p962_p13, %s2697_s30, 1 }
  0x3d   : > { %s3328_s27 = sld [smem:[#allocation26_spill]] }
  0x3e   : > { %s2401_s17 = sshll.u32 %s2925_s8, 5  ;;  %s997_s28 = scalar_lea.vmem %s3275_s13, %s2925_s8 }
  0x3f   : > { %s1008_s29 = scalar_lea.vmem %s3278_s16, %s2925_s8  ;;  %s3329_s23 = sld [smem:[#allocation29_spill]] }
  0x40   : > { %s2935_s3 = scalar_lea.vmem %s3325_s2, %s2401_s17  ;;  %s1005_s2 = scalar_lea.vmem %s3277_s15, %s2925_s8 }
  0x41   : > { %s2940_s19 = scalar_lea.vmem %s3326_s21, %s2401_s17  ;;  %s991_s21 = scalar_lea.vmem %s3272_s10, %s2925_s8 }
  0x42   : > { %1015 = sbr.rel (%p2356_p0) target bundleno = 77 (0x4d), region = 120 }
  0x43   : > { %s2949_s4 = scalar_lea.vmem %s3328_s27, %s2401_s17  ;;  %s2404_s27 = sshll.u32 %s2925_s8, 6 }
  0x44   : > { %s2975_s20 = scalar_lea.vmem %s3276_s14, %s2404_s27  ;;  %s3330_s17 = sld [smem:[#allocation20_spill]] (!%p2356_p0) }
  0x45   : > { %s1011_s1 = scalar_lea.vmem %s3329_s23, %s2925_s8 }
  0x47   : > { %vm1018_vm0 = vcmask 261120  }
  0x4a   : > { %v1016_v0 = vld [vmem:[%s3330_s17] sm:$0xff]  ;;  %v1017_v1 = vld [vmem:[%s3330_s17 + $0x8] sm:$0xff] }
  0x4b   : > { %1019 = vst.msk [vmem:[#allocation2] sm:$0xff] %vm1018_vm0, %v1016_v0 }
  0x4c   : > { %1020 = vst.msk [vmem:[#allocation2 + $0x8] sm:$0xff] %vm1018_vm0, %v1017_v1 }
  0x4d PF: > { %vm1027_vm1 = vcmask 261120   ;;  %v2709_v6 = vmov 32.0   ;;  %v1098_v23 = vld [vmem:[%s2935_s3 + $0x18] sm:$0xff]  ;;  %v1097_v26 = vld [vmem:[%s2935_s3 + $0x10] sm:$0xff]  ;;  %v1096_v29 = vld [vmem:[%s2935_s3 + $0x8] sm:$0xff]  ;;  %s3331_s25 = scalar_lea.vmem %s3273_s11, %s2925_s8  ;;  %s3332_s6 = sld [smem:[#allocation25_spill]] }
  0x4e   : > { %2498 = vrcp.f32 %v2709_v6  ;;  %v1135_v24 = vld [vmem:[%s2940_s19 + $0x18] sm:$0xff]  ;;  %1121 = vmatpush.msra.mxu0 %v1098_v23  ;;  %v1134_v27 = vld [vmem:[%s2940_s19 + $0x10] sm:$0xff]  ;;  %v1133_v30 = vld [vmem:[%s2940_s19 + $0x8] sm:$0xff]  ;;  %s3334_s24 = sld [smem:[#allocation23_spill]]  ;;  %vm1194_vm7 = vcmask 64512   ;;  %s2710_s27 = smov 120  }
  0x4f   : > { %v1166_v25 = vld [vmem:[%s2949_s4 + $0x18] sm:$0xff]  ;;  %1152 = vmatpush.msra.mxu1 %v1135_v24  ;;  %v1165_v28 = vld [vmem:[%s2949_s4 + $0x10] sm:$0xff]  ;;  %v1164_v31 = vld [vmem:[%s2949_s4 + $0x8] sm:$0xff]  ;;  %s2711_s18 = smov 112   ;;  %s2712_s23 = smov 104   ;;  %vm1755_vm8 = vcmask 130048  }
  0x50   : > { %1183 = vmatpush.msra.mxu2 %v1166_v25  ;;  %1122 = vmatpush.msra.mxu0 %v1097_v26  ;;  %v1095_v32 = vld [vmem:[%s2935_s3] sm:$0xff]  ;;  %s3337_s26 = sld [smem:[#allocation21_spill]]  ;;  %s2713_s22 = smov 8   ;;  %vm1758_vm9 = vcmask 195584   ;;  %vm1913_vm14 = vcmask 523264  }
  0x51   : > { %1153 = vmatpush.msra.mxu1 %v1134_v27  ;;  %v1132_v33 = vld [vmem:[%s2940_s19] sm:$0xff]  ;;  %s3336_s19 = scalar_lea.vmem %s3269_s7, %s2925_s8  ;;  %s3338_s0 = sld [smem:[#allocation18_spill]] }
  0x52   : > { %v2996_v2 = vld [vmem:[#allocation2] sm:$0xff]  ;;  %1184 = vmatpush.msra.mxu2 %v1165_v28  ;;  %1123 = vmatpush.msra.mxu0 %v1096_v29  ;;  %s3340_s3 = sld [smem:[#allocation19_spill]]  ;;  %p2393_p1 = scmp.ne.s32.totalorder %s2697_s30, 1 }
  0x53   : > { %v1028_v3 = vsel %vm1027_vm1, %v2996_v2, 0.0  ;;  %v3000_v4 = vld [vmem:[#allocation2 + $0x8] sm:$0xff]  ;;  %1154 = vmatpush.msra.mxu1 %v1133_v30  ;;  %v1163_v34 = vld [vmem:[%s2949_s4] sm:$0xff]  ;;  %s3333_s5 = scalar_lea.vmem %s3332_s6, %s2925_s8  ;;  %s3339_s4 = scalar_lea.vmem %s3271_s9, %s2925_s8 }
  0x54   : > { %1029 = vadd.xlane.f32.xlu0 %v1028_v3  ;;  %v1031_v5 = vsel %vm1027_vm1, %v3000_v4, 0.0  ;;  %v2499_v7 = vpop.eup %2498  ;;  %1185 = vmatpush.msra.mxu2 %v1164_v31  ;;  %v2486_v56 = vld [vmem:[%s991_s21] ss:$0 sm:$0xff]  ;;  %s3335_s12 = scalar_lea.vmem %s3334_s24, %s2925_s8  ;;  %s2714_s24 = smov 16  }
  0x55   : > { %v1035_v8 = vmul.f32 32.0, %v2499_v7  ;;  %vm1039_vm2 = vweird.f32 %v2499_v7  ;;  %1124 = vmatpush.msra.mxu0 %v1095_v32  ;;  %1155 = vmatpush.msra.mxu1 %v1132_v33  ;;  %v2487_v61 = vld [vmem:[%s3331_s25] ss:$0 sm:$0xff]  ;;  %s3344_s25 = sld [smem:[#allocation31_spill]] (!%p2393_p1) }
  0x56   : > { %1186 = vmatpush.msra.mxu2 %v1163_v34  ;;  %v2491_v32 = vld [vmem:[%s3337_s26] ss:$0 sm:$0xff] }
  0x57   : > { %v1036_v9 = vsub.f32 1.0, %v1035_v8 }
  0x59   : > { %v1037_v10 = vmul.f32 %v2499_v7, %v1036_v9  ;;  %v2489_v9 = vld [vmem:[%s3333_s5] ss:$0 sm:$0xff] }
  0x5b   : > { %v1038_v11 = vadd.f32 %v2499_v7, %v1037_v10  ;;  %v2488_v10 = vld [vmem:[%s3335_s12] ss:$0 sm:$0xff]  ;;  %s2715_s12 = smov 24  }
  0x5c   : > { %1032 = vadd.xlane.f32.xlu0 %v1031_v5 }
  0x5d   : > { %v3004_v12 = vsel %vm1039_vm2, %v2499_v7, %v1038_v11 }
  0xc7   : > { %v1030_v13 = vpop.xlane.xlu0 %1029 }
  0xc8   : > { %v1041_v14 = vmul.f32 %v3004_v12, %v1030_v13 }
  0xca   : > { %v3008_v15 = vsub.f32 %v2996_v2, %v1041_v14 }
  0xcc   : > { %v1045_v16 = vmul.f32 %v3008_v15, %v3008_v15  ;;  %v1082_v60 = vmul.f32 %v2486_v56, %v3008_v15 }
  0xce   : > { %v1047_v17 = vsel %vm1027_vm1, %v1045_v16, 0.0  ;;  %v2490_v16 = vld [vmem:[%s3336_s19] ss:$0 sm:$0xff] }
  0xcf   : > { %1048 = vadd.xlane.f32.xlu1 %v1047_v17  ;;  %v1033_v18 = vpop.xlane.xlu0 %1032 }
  0xd0   : > { %v1042_v19 = vmul.f32 %v3004_v12, %v1033_v18 }
  0xd2   : > { %v3015_v20 = vsub.f32 %v3000_v4, %v1042_v19 }
  0xd4   : > { %v1046_v21 = vmul.f32 %v3015_v20, %v3015_v20  ;;  %v1083_v5 = vmul.f32 %v2486_v56, %v3015_v20 }
  0xd6   : > { %v1050_v22 = vsel %vm1027_vm1, %v1046_v21, 0.0 }
  0xd7   : > { %1051 = vadd.xlane.f32.xlu1 %v1050_v22 }
 0x142   : > { %v1049_v35 = vpop.xlane.xlu1 %1048 }
 0x143   : > { %v1053_v36 = vmul.f32 0.032258064, %v1049_v35 }
 0x145   : > { %2500 = vrsqrt.f32 %v1053_v36  ;;  %vm1062_vm3 = vcmp.eq.f32.partialorder %v1053_v36, inf  ;;  %v1065_v49 = vand.u32 2147483648, %v1053_v36  ;;  %vm1064_vm4 = vcmp.eq.f32.partialorder %v1053_v36, 0.0 }
 0x14a   : > { %v1052_v37 = vpop.xlane.xlu1 %1051 }
 0x14b   : > { %v2501_v38 = vpop.eup %2500  ;;  %v1054_v39 = vmul.f32 0.032258064, %v1052_v37 }
 0x14c   : > { %v1056_v40 = vmul.f32 %v2501_v38, %v1053_v36 }
 0x14d   : > { %2502 = vrsqrt.f32 %v1054_v39  ;;  %vm1074_vm5 = vcmp.eq.f32.partialorder %v1054_v39, inf  ;;  %v1077_v58 = vand.u32 2147483648, %v1054_v39  ;;  %vm1076_vm6 = vcmp.eq.f32.partialorder %v1054_v39, 0.0 }
 0x14e   : > { %v1057_v41 = vmul.f32 %v2501_v38, %v1056_v40 }
 0x150   : > { %v1058_v42 = vmul.f32 0.5, %v1057_v41 }
 0x152   : > { %v1059_v43 = vsub.f32 1.5, %v1058_v42  ;;  %v2492_v42 = vld [vmem:[%s3337_s26 + $0x1] ss:$0 sm:$0xff] }
 0x153   : > { %v2503_v44 = vpop.eup %2502 }
 0x154   : > { %v1068_v45 = vmul.f32 %v2503_v44, %v1054_v39  ;;  %v1060_v46 = vmul.f32 %v2501_v38, %v1059_v43 }
 0x156   : > { %v1061_v47 = vmul.f32 %v1060_v46, %v1053_v36  ;;  %v1069_v48 = vmul.f32 %v2503_v44, %v1068_v45 }
 0x158   : > { %v1063_v50 = vsel %vm1062_vm3, %v1053_v36, %v1061_v47  ;;  %v1070_v51 = vmul.f32 0.5, %v1069_v48 }
 0x159   : > { %v1066_v52 = vsel %vm1064_vm4, %v1065_v49, %v1063_v50 }
 0x15a   : > { %v1084_v53 = vadd.f32 1e-06, %v1066_v52  ;;  %v1071_v54 = vsub.f32 1.5, %v1070_v51 }
 0x15c   : > { %2504 = vrcp.f32 %v1084_v53  ;;  %v1072_v55 = vmul.f32 %v2503_v44, %v1071_v54 }
 0x15e   : > { %v1073_v57 = vmul.f32 %v1072_v55, %v1054_v39 }
 0x160   : > { %v1075_v59 = vsel %vm1074_vm5, %v1054_v39, %v1073_v57 }
 0x161   : > { %v1078_v62 = vsel %vm1076_vm6, %v1077_v58, %v1075_v59 }
 0x162   : > { %v2505_v63 = vpop.eup %2504  ;;  %v1085_v0 = vadd.f32 1e-06, %v1078_v62 }
 0x163   : > { %v1088_v1 = vmul.f32 %v2505_v63, %v1082_v60 }
 0x164   : > { %2506 = vrcp.f32 %v1085_v0 }
 0x165   : > { %v1093_v3 = vadd.f32 %v2487_v61, %v1088_v1 }
 0x167   : > { %2357 = vmatmul.msk.f32.vlgmr.msra.gmra.mxu0 %vm1027_vm1, %v1093_v3  ;;  %2359 = vmatmul.msk.f32.vlgmr.msra.gmra.mxu1 %vm1027_vm1, %v1093_v3 }
 0x168   : > { %2361 = vmatmul.msk.f32.vlgmr.msra.gmra.mxu2 %vm1027_vm1, %v1093_v3 }
 0x16a   : > { %v2507_v6 = vpop.eup %2506 }
 0x16b   : > { %v1089_v7 = vmul.f32 %v2507_v6, %v1083_v5 }
 0x16d   : > { %v1094_v8 = vadd.f32 %v2487_v61, %v1089_v7 }
 0x16f   : > { %2358 = vmatmul.msk.f32.gmra.mxu0 %vm1027_vm1, %v1094_v8  ;;  %2360 = vmatmul.msk.f32.gmra.mxu1 %vm1027_vm1, %v1094_v8 }
 0x170   : > { %2362 = vmatmul.msk.f32.gmra.mxu2 %vm1027_vm1, %v1094_v8 }
 0x1e4   : > { %v1126_v11 = vpop.f32.mrf.mxu0  ;;  %v1157_v13 = vpop.f32.mrf.mxu1 }
 0x1e5   : > { %v1158_v14 = vadd.f32 %v2489_v9, %v1157_v13  ;;  %v1127_v15 = vadd.f32 %v2488_v10, %v1126_v11 }
 0x1e7   : > { %1327 = vrot.lane.b32.xlu2 %v1158_v14, %s2710_s27  ;;  %2363 = vmatpush.xpose.msk.msrb.mxu0 %vm1194_vm7, %v1158_v14 }
 0x1e8   : > { %1463 = vrot.lane.b32.xlu1 %v1158_v14, %s2711_s18 }
 0x1ea   : > { %2364 = vmatmul.msk.f32.vlgmr.msrb.gmra.mxu0 %vm1194_vm7, %v1127_v15 }
 0x1eb   : > { %v1188_v17 = vpop.f32.mrf.mxu2 }
 0x1ec   : > { %v1160_v18 = vpop.f32.mrf.mxu1  ;;  %v1129_v20 = vpop.f32.mrf.mxu0  ;;  %v3069_v21 = vadd.f32 %v2490_v16, %v1188_v17 }
 0x1ed   : > { %v1161_v19 = vadd.f32 %v2489_v9, %v1160_v18  ;;  %v1130_v22 = vadd.f32 %v2488_v10, %v1129_v20 }
 0x1ef   : > { %1325 = vrot.lane.b32.xlu2 %v1127_v15, %s2710_s27  ;;  %1355 = vrot.lane.b32.xlu0 %v1161_v19, %s2710_s27 }
 0x1f0   : > { %1595 = vrot.lane.b32.xlu1 %v1127_v15, %s2712_s23  ;;  %2365 = vmatpush.xpose.msk.msra.mxu3 %vm1194_vm7, %v1161_v19 }
 0x1f3   : > { %v1191_v23 = vpop.f32.mrf.mxu2  ;;  %2366 = vmatmul.msk.f32.vlgmr.msra.gmra.mxu3 %vm1194_vm7, %v1130_v22 }
 0x1f4   : > { %1297 = vmatpush.msrb.mxu3 %v3069_v21  ;;  %v3077_v24 = vadd.f32 %v2490_v16, %v1191_v23 }
 0x1f6   : > { %1320 = vmatpush.msra.mxu0 %v3077_v24 }
 0x1f7   : > { %1461 = vrot.lane.b32.xlu2 %v1127_v15, %s2711_s18  ;;  %1597 = vrot.lane.b32.xlu0 %v1158_v14, %s2712_s23 }
 0x1ff   : > { %1625 = vrot.lane.b32.xlu0 %v1161_v19, %s2712_s23  ;;  %1353 = vrot.lane.b32.xlu2 %v1130_v22, %s2710_s27 }
 0x207   : > { %1491 = vrot.lane.b32.xlu2 %v1161_v19, %s2711_s18 }
 0x20f   : > { %1489 = vrot.lane.b32.xlu2 %v1130_v22, %s2711_s18 }
 0x217   : > { %1623 = vrot.lane.b32.xlu2 %v1130_v22, %s2712_s23 }
 0x241   : > { %v1328_v25 = vpop.permute.xlu2 %1327 }
 0x242   : > { %2369 = vmatpush.xpose.msk.msrb.mxu1 %vm1194_vm7, %v1328_v25 }
 0x249   : > { %v1326_v26 = vpop.permute.xlu2 %1325 }
 0x24a   : > { %2370 = vmatmul.msk.f32.vlgmr.msrb.gmra.mxu1 %vm1194_vm7, %v1326_v26 }
 0x251   : > { %v1462_v27 = vpop.permute.xlu2 %1461 }
 0x259   : > { %v1354_v28 = vpop.permute.xlu2 %1353 }
 0x25a   : > { %v1464_v29 = vpop.permute.xlu1 %1463 }
 0x25b   : > { %2375 = vmatpush.xpose.msk.msra.mxu1 %vm1194_vm7, %v1464_v29 }
 0x25e   : > { %2376 = vmatmul.msk.f32.vlgmr.msra.gmra.mxu1 %vm1194_vm7, %v1462_v27 }
 0x261   : > { %v1356_v30 = vpop.permute.xlu0 %1355  ;;  %v1492_v31 = vpop.permute.xlu2 %1491 }
 0x262   : > { %2371 = vmatpush.xpose.msk.msrb.mxu2 %vm1194_vm7, %v1356_v30  ;;  %v1596_v39 = vpop.permute.xlu1 %1595 }
 0x265   : > { %2372 = vmatmul.msk.f32.vlgmr.msrb.gmra.mxu2 %vm1194_vm7, %v1354_v28 }
 0x266   : > { %2377 = vmatpush.xpose.msk.msra.mxu2 %vm1194_vm7, %v1492_v31 }
 0x267   : > { %v1218_v33 = vpop.f32.mrf.mxu0 }
 0x268   : > { %v1247_v34 = vmul.f32 0.35355338, %v1218_v33 }
 0x269   : > { %v1598_v35 = vpop.permute.xlu0 %1597  ;;  %v1490_v36 = vpop.permute.xlu2 %1489 }
 0x26a   : > { %2381 = vmatpush.xpose.msk.msrb.mxu1 %vm1194_vm7, %v1598_v35  ;;  %v1255_v37 = vadd.f32 %v2491_v32, %v1247_v34 }
 0x26c   : > { %v1257_v38 = vsel %vm1194_vm7, %v1255_v37, -inf }
 0x26d   : > { %1258 = vmax.xlane.f32.xlu1 %v1257_v38  ;;  %2378 = vmatmul.msk.f32.vlgmr.msra.gmra.mxu2 %vm1194_vm7, %v1490_v36  ;;  %v2481_v36 = vpack.i.bf16 %v3077_v24, %v3069_v21 }
 0x26e   : > { %2382 = vmatmul.msk.f32.vlgmr.msrb.gmra.mxu1 %vm1194_vm7, %v1596_v39 }
 0x271   : > { %v1626_v40 = vpop.permute.xlu0 %1625  ;;  %v1624_v41 = vpop.permute.xlu2 %1623 }
 0x272   : > { %2383 = vmatpush.xpose.msk.msrb.mxu2 %vm1194_vm7, %v1626_v40 }
 0x275   : > { %2384 = vmatmul.msk.f32.vlgmr.msrb.gmra.mxu2 %vm1194_vm7, %v1624_v41 }
 0x276   : > { %v1244_v43 = vpop.f32.mrf.mxu3 }
 0x277   : > { %v1248_v44 = vmul.f32 0.35355338, %v1244_v43 }
 0x279   : > { %v1256_v45 = vadd.f32 %v2492_v42, %v1248_v44 }
 0x27b   : > { %v1260_v46 = vsel %vm1194_vm7, %v1256_v45, -inf }
 0x27c   : > { %1261 = vmax.xlane.f32.xlu2 %v1260_v46 }
 0x2c7   : > { %v1350_v47 = vpop.f32.mrf.mxu1 }
 0x2c8   : > { %v1381_v48 = vmul.f32 0.35355338, %v1350_v47 }
 0x2ca   : > { %v1383_v49 = vadd.f32 %v2491_v32, %v1381_v48 }
 0x2cc   : > { %v1385_v50 = vsel %vm1194_vm7, %v1383_v49, -inf }
 0x2cd   : > { %1386 = vmax.xlane.f32.xlu0 %v1385_v50 }
 0x2db   : > { %v1486_v51 = vpop.f32.mrf.mxu1 }
 0x2dc   : > { %v1517_v52 = vmul.f32 0.35355338, %v1486_v51 }
 0x2de   : > { %v1519_v53 = vadd.f32 %v2491_v32, %v1517_v52 }
 0x2e0   : > { %v1521_v54 = vsel %vm1194_vm7, %v1519_v53, -inf  ;;  %v1259_v55 = vpop.xlane.xlu1 %1258 }
 0x2e1   : > { %1522 = vmax.xlane.f32.xlu1 %v1521_v54  ;;  %v1263_v56 = vsub.f32 %v1255_v37, %v1259_v55 }
 0x2e3   : > { %v1265_v57 = vmul.f32 1.442695, %v1263_v56 }
 0x2e5   : > { %2508 = vpow2.f32 %v1265_v57 }
 0x2e8   : > { %v1378_v58 = vpop.f32.mrf.mxu2 }
 0x2e9   : > { %v1382_v59 = vmul.f32 0.35355338, %v1378_v58 }
 0x2eb   : > { %v2509_v60 = vpop.eup %2508  ;;  %v1620_v61 = vpop.f32.mrf.mxu1  ;;  %v1384_v62 = vadd.f32 %v2492_v42, %v1382_v59 }
 0x2ec   : > { %v1651_v63 = vmul.f32 0.35355338, %v1620_v61  ;;  %v1269_v0 = vsel %vm1194_vm7, %v2509_v60, 0.0 }
 0x2ed   : > { %1270 = vadd.xlane.f32.xlu2 %v1269_v0  ;;  %v1388_v1 = vsel %vm1194_vm7, %v1384_v62, -inf }
 0x2ee   : > { %1389 = vmax.xlane.f32.xlu0 %v1388_v1  ;;  %v1653_v7 = vadd.f32 %v2491_v32, %v1651_v63 }
 0x2ef   : > { %v1262_v3 = vpop.xlane.xlu2 %1261 }
 0x2f0   : > { %v1264_v5 = vsub.f32 %v1256_v45, %v1262_v3  ;;  %v1514_v6 = vpop.f32.mrf.mxu2  ;;  %v1655_v11 = vsel %vm1194_vm7, %v1653_v7, -inf }
 0x2f1   : > { %v1518_v8 = vmul.f32 0.35355338, %v1514_v6 }
 0x2f2   : > { %v1267_v9 = vmul.f32 1.442695, %v1264_v5 }
 0x2f3   : > { %v1520_v10 = vadd.f32 %v2492_v42, %v1518_v8 }
 0x2f4   : > { %2510 = vpow2.f32 %v1267_v9 }
 0x2f5   : > { %1656 = vmax.xlane.f32.xlu2 %v1655_v11  ;;  %v1524_v13 = vsel %vm1194_vm7, %v1520_v10, -inf }
 0x2f6   : > { %1525 = vmax.xlane.f32.xlu1 %v1524_v13 }
 0x2f8   : > { %v1648_v14 = vpop.f32.mrf.mxu2 }
 0x2f9   : > { %v1652_v16 = vmul.f32 0.35355338, %v1648_v14 }
 0x2fa   : > { %v2511_v15 = vpop.eup %2510 }
 0x2fb   : > { %v1272_v17 = vsel %vm1194_vm7, %v2511_v15, 0.0  ;;  %v1654_v18 = vadd.f32 %v2492_v42, %v1652_v16 }
 0x2fc   : > { %1273 = vadd.xlane.f32.xlu0 %v1272_v17 }
 0x2fd   : > { %v1658_v19 = vsel %vm1194_vm7, %v1654_v18, -inf }
 0x304   : > { %1659 = vmax.xlane.f32.xlu0 %v1658_v19 }
 0x318   : > { %1543 = vrot.lane.b32.xlu0 %v3069_v21, %s2711_s18 }
 0x340   : > { %v1387_v20 = vpop.xlane.xlu0 %1386 }
 0x341   : > { %v1391_v22 = vsub.f32 %v1383_v49, %v1387_v20 }
 0x343   : > { %v1393_v23 = vmul.f32 1.442695, %v1391_v22 }
 0x345   : > { %2512 = vpow2.f32 %v1393_v23 }
 0x34b   : > { %v2513_v25 = vpop.eup %2512 }
 0x34c   : > { %v1397_v26 = vsel %vm1194_vm7, %v2513_v25, 0.0 }
 0x34d   : > { %1398 = vadd.xlane.f32.xlu1 %v1397_v26 }
 0x354   : > { %v1523_v27 = vpop.xlane.xlu1 %1522 }
 0x355   : > { %v1527_v28 = vsub.f32 %v1519_v53, %v1523_v27 }
 0x357   : > { %v1529_v29 = vmul.f32 1.442695, %v1527_v28 }
 0x359   : > { %2514 = vpow2.f32 %v1529_v29 }
 0x35f   : > { %v2515_v30 = vpop.eup %2514 }
 0x360   : > { %v1271_v31 = vpop.xlane.xlu2 %1270  ;;  %v1533_v32 = vsel %vm1194_vm7, %v2515_v30, 0.0 }
 0x361   : > { %2516 = vrcp.f32 %v1271_v31  ;;  %1534 = vadd.xlane.f32.xlu2 %v1533_v32  ;;  %v1390_v33 = vpop.xlane.xlu0 %1389  ;;  %v1764_v31 = vld [vmem:[%s3338_s0 + $0x18] sm:$0xff]  ;;  %v1763_v32 = vld [vmem:[%s3338_s0 + $0x10] sm:$0xff] }
 0x362   : > { %v1392_v34 = vsub.f32 %v1384_v62, %v1390_v33  ;;  %1787 = vmatpush.msra.mxu1 %v1764_v31  ;;  %v1762_v33 = vld [vmem:[%s3338_s0 + $0x8] sm:$0xff] }
 0x364   : > { %v1395_v35 = vmul.f32 1.442695, %v1392_v34  ;;  %1788 = vmatpush.msra.mxu1 %v1763_v32  ;;  %v1761_v34 = vld [vmem:[%s3338_s0] sm:$0xff] }
 0x365   : > { %v1905_v32 = vld [vmem:[%s2975_s20 + $0x20] sm:$0xff] }
 0x366   : > { %2518 = vpow2.f32 %v1395_v35  ;;  %2482 = vrot.lane.b32.xlu1 %v2481_v36, %s2710_s27  ;;  %1789 = vmatpush.msra.mxu1 %v1762_v33 }
 0x367   : > { %v2517_v37 = vpop.eup %2516 }
 0x368   : > { %v1657_v38 = vpop.xlane.xlu2 %1656  ;;  %v1277_v39 = vmul.f32 %v2517_v37, %v2509_v60  ;;  %1790 = vmatpush.msra.mxu1 %v1761_v34  ;;  %v1904_v34 = vld [vmem:[%s2975_s20 + $0x18] sm:$0xff] }
 0x369   : > { %v1661_v40 = vsub.f32 %v1653_v7, %v1657_v38  ;;  %v1526_v41 = vpop.xlane.xlu1 %1525 }
 0x36a   : > { %2367 = vmatmul.msk.f32.vlgmr.msrb.gmra.mxu3 %vm1194_vm7, %v1277_v39  ;;  %v1528_v43 = vsub.f32 %v1520_v10, %v1526_v41 }
 0x36b   : > { %v1663_v42 = vmul.f32 1.442695, %v1661_v40 }
 0x36c   : > { %v2519_v44 = vpop.eup %2518  ;;  %v1531_v46 = vmul.f32 1.442695, %v1528_v43 }
 0x36d   : > { %2520 = vpow2.f32 %v1663_v42  ;;  %v1400_v45 = vsel %vm1194_vm7, %v2519_v44, 0.0 }
 0x36e   : > { %1401 = vadd.xlane.f32.xlu0 %v1400_v45 }
 0x36f   : > { %v1274_v47 = vpop.xlane.xlu0 %1273 }
 0x370   : > { %2522 = vrcp.f32 %v1274_v47  ;;  %v2493_v47 = vld [vmem:[%s3339_s4] ss:$0 sm:$0xff] }
 0x371   : > { %2524 = vpow2.f32 %v1531_v46 }
 0x373   : > { %v2521_v48 = vpop.eup %2520 }
 0x374   : > { %v1667_v49 = vsel %vm1194_vm7, %v2521_v48, 0.0 }
 0x375   : > { %1668 = vadd.xlane.f32.xlu2 %v1667_v49 }
 0x376   : > { %v2523_v50 = vpop.eup %2522 }
 0x377   : > { %v1278_v51 = vmul.f32 %v2523_v50, %v2511_v15  ;;  %v2525_v52 = vpop.eup %2524  ;;  %v1660_v53 = vpop.xlane.xlu0 %1659 }
 0x378   : > { %v1536_v54 = vsel %vm1194_vm7, %v2525_v52, 0.0  ;;  %v1662_v55 = vsub.f32 %v1654_v18, %v1660_v53 }
 0x379   : > { %2368 = vmatmul.msk.f32.vlgmr.msra.gmra.mxu0 %vm1194_vm7, %v1278_v51 }
 0x37a   : > { %v1665_v56 = vmul.f32 1.442695, %v1662_v55 }
 0x37c   : > { %2526 = vpow2.f32 %v1665_v56 }
 0x37d   : > { %1537 = vadd.xlane.f32.xlu2 %v1536_v54 }
 0x382   : > { %1569 = vrot.lane.b32.xlu0 %v3077_v24, %s2711_s18  ;;  %v2527_v57 = vpop.eup %2526 }
 0x383   : > { %v1670_v58 = vsel %vm1194_vm7, %v2527_v57, 0.0 }
 0x38a   : > { %1703 = vrot.lane.b32.xlu0 %v3077_v24, %s2712_s23  ;;  %v1544_v63 = vpop.permute.xlu0 %1543 }
 0x390   : > { %1671 = vadd.xlane.f32.xlu1 %v1670_v58 }
 0x395   : > { %1677 = vrot.lane.b32.xlu2 %v3069_v21, %s2712_s23 }
 0x3c0   : > { %v1399_v59 = vpop.xlane.xlu1 %1398 }
 0x3c1   : > { %2528 = vrcp.f32 %v1399_v59 }
 0x3c7   : > { %v2529_v61 = vpop.eup %2528 }
 0x3c8   : > { %v1405_v3 = vmul.f32 %v2529_v61, %v2513_v25 }
 0x3d4   : > { %v1535_v60 = vpop.xlane.xlu2 %1534 }
 0x3d5   : > { %2530 = vrcp.f32 %v1535_v60 }
 0x3d8   : > { %v2483_v62 = vpop.permute.xlu1 %2482 }
 0x3d9   : > { %v2485_v0 = vunpack.i.h.bf16 %v2483_v62  ;;  %v2484_v1 = vunpack.i.l.bf16 %v2483_v62 }
 0x3db   : > { %1429 = vmatpush.msra.mxu3 %v2484_v1  ;;  %1456 = vmatpush.msrb.mxu0 %v2485_v0  ;;  %v2531_v24 = vpop.eup %2530  ;;  %v1865_v0 = vld [vmem:[%s3340_s3 + $0x18] sm:$0xff]  ;;  %v1864_v1 = vld [vmem:[%s3340_s3 + $0x10] sm:$0xff] }
 0x3dc   : > { %2373 = vmatmul.msk.f32.vlgmr.msra.gmra.mxu3 %vm1194_vm7, %v1405_v3  ;;  %v1541_v6 = vmul.f32 %v2531_v24, %v2515_v30  ;;  %1888 = vmatpush.msra.mxu2 %v1865_v0  ;;  %v1863_v3 = vld [vmem:[%s3340_s3 + $0x8] sm:$0xff] }
 0x3dd   : > { %1564 = vmatpush.msrb.mxu3 %v1544_v63 }
 0x3de   : > { %1889 = vmatpush.msra.mxu2 %v1864_v1 }
 0x3e0   : > { %1890 = vmatpush.msra.mxu2 %v1863_v3 }
 0x3e1   : > { %v1402_v5 = vpop.xlane.xlu0 %1401 }
 0x3e2   : > { %2532 = vrcp.f32 %v1402_v5 }
 0x3e4   : > { %2379 = vmatmul.msk.f32.vlgmr.msrb.gmra.mxu3 %vm1194_vm7, %v1541_v6  ;;  %v1862_v6 = vld [vmem:[%s3340_s3] sm:$0xff]  ;;  %s3343_s3 = sld [smem:[#allocation30_spill]] (!%p2393_p1) }
 0x3e5   : > { %1891 = vmatpush.msra.mxu2 %v1862_v6 }
 0x3e8   : > { %v2533_v21 = vpop.eup %2532  ;;  %v1669_v7 = vpop.xlane.xlu2 %1668 }
 0x3e9   : > { %v1406_v8 = vmul.f32 %v2533_v21, %v2519_v44  ;;  %2534 = vrcp.f32 %v1669_v7 }
 0x3eb   : > { %2374 = vmatmul.msk.f32.vlgmr.msrb.gmra.mxu0 %vm1194_vm7, %v1406_v8 }
 0x3ed   : > { %v1299_v22 = vpop.f32.mrf.mxu3 }
 0x3ef   : > { %v2535_v11 = vpop.eup %2534 }
 0x3f0   : > { %v1538_v9 = vpop.xlane.xlu2 %1537  ;;  %v1675_v14 = vmul.f32 %v2535_v11, %v2521_v48 }
 0x3f1   : > { %2536 = vrcp.f32 %v1538_v9 }
 0x3f4   : > { %v1570_v10 = vpop.permute.xlu0 %1569 }
 0x3f5   : > { %1590 = vmatpush.msra.mxu0 %v1570_v10 }
 0x3f6   : > { %v1322_v25 = vpop.f32.mrf.mxu0 }
 0x3f7   : > { %v2537_v13 = vpop.eup %2536 }
 0x3f8   : > { %v1542_v15 = vmul.f32 %v2537_v13, %v2525_v52  ;;  %v1678_v16 = vpop.permute.xlu2 %1677 }
 0x3f9   : > { %1698 = vmatpush.msra.mxu3 %v1678_v16 }
 0x3fa   : > { %2380 = vmatmul.msk.f32.vlgmr.msra.gmra.mxu0 %vm1194_vm7, %v1542_v15  ;;  %2385 = vmatmul.msk.f32.vlgmr.msra.gmra.mxu3 %vm1194_vm7, %v1675_v14 }
 0x3fc   : > { %v1704_v17 = vpop.permute.xlu0 %1703 }
 0x3fd   : > { %1724 = vmatpush.msrb.mxu0 %v1704_v17 }
 0x403   : > { %v1672_v18 = vpop.xlane.xlu1 %1671 }
 0x404   : > { %2538 = vrcp.f32 %v1672_v18  ;;  %v2494_v18 = vld [vmem:[%s1008_s29] ss:$0 sm:$0xff]  ;;  %s3345_s29 = sld [smem:[#allocation33_spill]] (!%p2393_p1) }
 0x40a   : > { %v2539_v19 = vpop.eup %2538 }
 0x40b   : > { %v1676_v20 = vmul.f32 %v2539_v19, %v2527_v57 }
 0x40d   : > { %2386 = vmatmul.msk.f32.vlgmr.msrb.gmra.mxu0 %vm1194_vm7, %v1676_v20  ;;  %v2495_v20 = vld [vmem:[%s1011_s1] ss:$0 sm:$0xff] }
 0x45f   : > { %v1431_v23 = vpop.f32.mrf.mxu3 }
 0x460   : > { %1731 = vrot.lane.b32.xlu2 %v1431_v23, %s2713_s22 }
 0x467   : > { %v1566_v26 = vpop.f32.mrf.mxu3 }
 0x468   : > { %1739 = vrot.lane.b32.xlu0 %v1566_v26, %s2714_s24  ;;  %v1458_v27 = vpop.f32.mrf.mxu0 }
 0x470   : > { %1733 = vrot.lane.b32.xlu0 %v1458_v27, %s2713_s22 }
 0x477   : > { %v1592_v29 = vpop.f32.mrf.mxu0 }
 0x47d   : > { %v1700_v28 = vpop.f32.mrf.mxu3 }
 0x47e   : > { %1747 = vrot.lane.b32.xlu2 %v1700_v28, %s2715_s12  ;;  %v1908_v28 = vld [vmem:[%s2975_s20 + $0x38] sm:$0xff] }
 0x47f   : > { %1928 = vmatpush.msrb.mxu3 %v1908_v28 }
 0x486   : > { %1741 = vrot.lane.b32.xlu2 %v1592_v29, %s2714_s24  ;;  %v1907_v29 = vld [vmem:[%s2975_s20 + $0x30] sm:$0xff] }
 0x487   : > { %1929 = vmatpush.msrb.mxu3 %v1907_v29 }
 0x48a   : > { %v1726_v30 = vpop.f32.mrf.mxu0 }
 0x48b   : > { %1749 = vrot.lane.b32.xlu0 %v1726_v30, %s2715_s12  ;;  %v1906_v30 = vld [vmem:[%s2975_s20 + $0x28] sm:$0xff] }
 0x48c   : > { %1930 = vmatpush.msrb.mxu3 %v1906_v30 }
 0x48e   : > { %1931 = vmatpush.msrb.mxu3 %v1905_v32 }
 0x490   : > { %1932 = vmatpush.msrb.mxu3 %v1904_v34 }
 0x4ba   : > { %v1732_v35 = vpop.permute.xlu2 %1731 }
 0x4bb   : > { %v1753_v36 = vsel %vm1194_vm7, %v1299_v22, %v1732_v35 }
 0x4d8   : > { %v1748_v38 = vpop.permute.xlu2 %1747 }
 0x4da   : > { %v1740_v37 = vpop.permute.xlu0 %1739 }
 0x4db   : > { %v1756_v39 = vsel %vm1755_vm8, %v1753_v36, %v1740_v37 }
 0x4dc   : > { %v1759_v40 = vsel %vm1758_vm9, %v1756_v39, %v1748_v38 }
 0x4dd   : > { %2387 = vmatmul.msk.f32.vlgmr.msra.gmra.mxu1 %vm1027_vm1, %v1759_v40 }
 0x4e0   : > { %v1742_v43 = vpop.permute.xlu2 %1741 }
 0x4e2   : > { %v1734_v41 = vpop.permute.xlu0 %1733 }
 0x4e3   : > { %v1754_v42 = vsel %vm1194_vm7, %v1322_v25, %v1734_v41 }
 0x4e4   : > { %v1757_v45 = vsel %vm1755_vm8, %v1754_v42, %v1742_v43 }
 0x4fd   : > { %v1750_v44 = vpop.permute.xlu0 %1749 }
 0x4fe   : > { %v1760_v46 = vsel %vm1758_vm9, %v1757_v45, %v1750_v44 }
 0x4ff   : > { %2388 = vmatmul.msk.f32.gmra.mxu1 %vm1027_vm1, %v1760_v46 }
 0x55a   : > { %v1792_v48 = vpop.f32.mrf.mxu1 }
 0x55b   : > { %v1793_v49 = vadd.f32 %v2493_v47, %v1792_v48  ;;  %v1903_v48 = vld [vmem:[%s2975_s20 + $0x10] sm:$0xff] }
 0x55c   : > { %1933 = vmatpush.msrb.mxu3 %v1903_v48 }
 0x55d   : > { %v3154_v50 = vadd.f32 %v1793_v49, %v2996_v2  ;;  %v1902_v49 = vld [vmem:[%s2975_s20 + $0x8] sm:$0xff] }
 0x55e   : > { %1934 = vmatpush.msrb.mxu3 %v1902_v49 }
 0x55f   : > { %v1802_v51 = vsel %vm1027_vm1, %v3154_v50, 0.0 }
 0x560   : > { %1803 = vadd.xlane.f32.xlu1 %v1802_v51  ;;  %v1901_v51 = vld [vmem:[%s2975_s20] sm:$0xff] }
 0x561   : > { %1935 = vmatpush.msrb.mxu3 %v1901_v51 }
 0x57c   : > { %v1795_v52 = vpop.f32.mrf.mxu1 }
 0x57d   : > { %v1796_v53 = vadd.f32 %v2493_v47, %v1795_v52  ;;  %v2496_v52 = vld [vmem:[%s997_s28] ss:$0 sm:$0xff] }
 0x57f   : > { %v3159_v54 = vadd.f32 %v1796_v53, %v3000_v4 }
 0x581   : > { %v1805_v55 = vsel %vm1027_vm1, %v3159_v54, 0.0 }
 0x582   : > { %1806 = vadd.xlane.f32.xlu2 %v1805_v55 }
 0x5d3   : > { %v1804_v56 = vpop.xlane.xlu1 %1803 }
 0x5d4   : > { %v1808_v2 = vmul.f32 %v1804_v56, %v3004_v12 }
 0x5d6   : > { %v1810_v57 = vsub.f32 %v3154_v50, %v1808_v2 }
 0x5d8   : > { %v1812_v58 = vmul.f32 %v1810_v57, %v1810_v57  ;;  %v1849_v19 = vmul.f32 %v2494_v18, %v1810_v57 }
 0x5da   : > { %v1814_v59 = vsel %vm1027_vm1, %v1812_v58, 0.0 }
 0x5db   : > { %1815 = vadd.xlane.f32.xlu0 %v1814_v59  ;;  %v2497_v59 = vld [vmem:[%s1005_s2] ss:$0 sm:$0xff]  ;;  %s3342_s2 = sld [smem:[#allocation32_spill]] (!%p2393_p1) }
 0x5f5   : > { %v1807_v60 = vpop.xlane.xlu2 %1806 }
 0x5f6   : > { %v1809_v4 = vmul.f32 %v1807_v60, %v3004_v12 }
 0x5f8   : > { %v3168_v61 = vsub.f32 %v3159_v54, %v1809_v4 }
 0x5fa   : > { %v1813_v62 = vmul.f32 %v3168_v61, %v3168_v61  ;;  %v1850_v44 = vmul.f32 %v2494_v18, %v3168_v61 }
 0x5fc   : > { %v1817_v63 = vsel %vm1027_vm1, %v1813_v62, 0.0 }
 0x5fd   : > { %1818 = vadd.xlane.f32.xlu1 %v1817_v63 }
 0x64e   : > { %v1816_v24 = vpop.xlane.xlu0 %1815 }
 0x64f   : > { %v1820_v5 = vmul.f32 0.032258064, %v1816_v24 }
 0x651   : > { %2540 = vrsqrt.f32 %v1820_v5  ;;  %vm1829_vm10 = vcmp.eq.f32.partialorder %v1820_v5, inf  ;;  %v1832_v14 = vand.u32 2147483648, %v1820_v5  ;;  %vm1831_vm11 = vcmp.eq.f32.partialorder %v1820_v5, 0.0 }
 0x657   : > { %v2541_v21 = vpop.eup %2540 }
 0x658   : > { %v1823_v7 = vmul.f32 %v2541_v21, %v1820_v5 }
 0x65a   : > { %v1824_v8 = vmul.f32 %v2541_v21, %v1823_v7 }
 0x65c   : > { %v1825_v9 = vmul.f32 0.5, %v1824_v8 }
 0x65e   : > { %v1826_v10 = vsub.f32 1.5, %v1825_v9 }
 0x660   : > { %v1827_v11 = vmul.f32 %v2541_v21, %v1826_v10 }
 0x662   : > { %v1828_v13 = vmul.f32 %v1827_v11, %v1820_v5 }
 0x664   : > { %v1830_v15 = vsel %vm1829_vm10, %v1820_v5, %v1828_v13 }
 0x665   : > { %v1833_v16 = vsel %vm1831_vm11, %v1832_v14, %v1830_v15 }
 0x666   : > { %v1851_v17 = vadd.f32 1e-06, %v1833_v16 }
 0x668   : > { %2542 = vrcp.f32 %v1851_v17 }
 0x66e   : > { %v2543_v22 = vpop.eup %2542 }
 0x66f   : > { %v1855_v23 = vmul.f32 %v2543_v22, %v1849_v19 }
 0x670   : > { %v1819_v25 = vpop.xlane.xlu1 %1818 }
 0x671   : > { %v1821_v26 = vmul.f32 0.032258064, %v1819_v25  ;;  %v1860_v27 = vadd.f32 %v2495_v20, %v1855_v23 }
 0x673   : > { %2544 = vrsqrt.f32 %v1821_v26  ;;  %2389 = vmatmul.msk.f32.vlgmr.msra.gmra.mxu2 %vm1027_vm1, %v1860_v27  ;;  %vm1841_vm12 = vcmp.eq.f32.partialorder %v1821_v26, inf  ;;  %v1844_v40 = vand.u32 2147483648, %v1821_v26  ;;  %vm1843_vm13 = vcmp.eq.f32.partialorder %v1821_v26, 0.0 }
 0x679   : > { %v2545_v31 = vpop.eup %2544 }
 0x67a   : > { %v1835_v33 = vmul.f32 %v2545_v31, %v1821_v26 }
 0x67c   : > { %v1836_v35 = vmul.f32 %v2545_v31, %v1835_v33 }
 0x67e   : > { %v1837_v36 = vmul.f32 0.5, %v1836_v35 }
 0x680   : > { %v1838_v37 = vsub.f32 1.5, %v1837_v36 }
 0x682   : > { %v1839_v38 = vmul.f32 %v2545_v31, %v1838_v37 }
 0x684   : > { %v1840_v39 = vmul.f32 %v1839_v38, %v1821_v26 }
 0x686   : > { %v1842_v41 = vsel %vm1841_vm12, %v1821_v26, %v1840_v39 }
 0x687   : > { %v1845_v42 = vsel %vm1843_vm13, %v1844_v40, %v1842_v41 }
 0x688   : > { %v1852_v43 = vadd.f32 1e-06, %v1845_v42 }
 0x68a   : > { %2546 = vrcp.f32 %v1852_v43 }
 0x690   : > { %v2547_v45 = vpop.eup %2546 }
 0x691   : > { %v1856_v46 = vmul.f32 %v2547_v45, %v1850_v44 }
 0x693   : > { %v1861_v47 = vadd.f32 %v2495_v20, %v1856_v46 }
 0x695   : > { %2390 = vmatmul.msk.f32.gmra.mxu2 %vm1027_vm1, %v1861_v47 }
 0x6f6   : > { %v1893_v53 = vpop.f32.mrf.mxu2 }
 0x6f7   : > { %v1894_v55 = vadd.f32 %v2496_v52, %v1893_v53 }
 0x6f9   : > { %v1899_v56 = vmax.f32 %v1894_v55, 0.0 }
 0x6fb   : > { %2391 = vmatmul.msk.f32.vlgmr.msrb.gmra.mxu3 %vm1913_vm14, %v1899_v56 }
 0x718   : > { %v1896_v2 = vpop.f32.mrf.mxu2 }
 0x719   : > { %v1897_v57 = vadd.f32 %v2496_v52, %v1896_v2 }
 0x71b   : > { %v1900_v58 = vmax.f32 %v1897_v57, 0.0 }
 0x71d   : > { %2392 = vmatmul.msk.f32.gmra.mxu3 %vm1913_vm14, %v1900_v58 }
 0x77e   : > { %v1937_v60 = vpop.f32.mrf.mxu3 }
 0x77f   : > { %v1938_v4 = vadd.f32 %v2497_v59, %v1937_v60 }
 0x781   : > { %v1943_v61 = vadd.f32 %v1938_v4, %v3154_v50 }
 0x783   : > { %1945 = vst.msk [vmem:[#allocation2] sm:$0xff] %vm1027_vm1, %v1943_v61 }
 0x7a0   : > { %v1940_v62 = vpop.f32.mrf.mxu3 }
 0x7a1   : > { %v1941_v63 = vadd.f32 %v2497_v59, %v1940_v62  ;;  %1950 = sbr.rel (%p2393_p1) target bundleno = 2384 (0x950), region = 124 }
 0x7a3   : > { %v1944_v0 = vadd.f32 %v1941_v63, %v3159_v54 }
 0x7a5   : > { %1946 = vst.msk [vmem:[#allocation2 + $0x8] sm:$0xff] %vm1027_vm1, %v1944_v0 }
 0x7a6   : > { %v1955_v1 = vrot.slane %v1944_v0, 7  ;;  %vm1962_vm15 = vcmask 253952   ;;  %vm1958_vm0 = vcmask 261127   ;;  %vm2021_vm2 = vcmask 1041409   ;;  %v2044_v18 = vld [vmem:[%s3342_s2 + $0x18] sm:$0xff]  ;;  %v2042_v19 = vld [vmem:[%s3342_s2 + $0x8] sm:$0xff] }
 0x7a7   : > { %v1959_v24 = vsel %vm1958_vm0, %v1943_v61, 0.0  ;;  %2064 = vmatpush.msra.mxu0 %v2044_v18  ;;  %v2041_v20 = vld [vmem:[%s3342_s2] sm:$0xff]  ;;  %vm2031_vm7 = vcmask 1040384   ;;  %vm2072_vm8 = vcmask 9216  }
 0x7a8   : > { %v1963_v3 = vsel %vm1962_vm15, %v1955_v1, 0.0  ;;  %v2548_v51 = vld [vmem:[%s3343_s3] ss:$0 sm:$0xff] }
 0x7a9   : > { %1964 = vadd.xlane.f32.xlu0 %v1963_v3  ;;  %v2549_v2 = vld [vmem:[%s3344_s25] ss:$0 sm:$0xff] }
 0x7aa   : > { %v2550_v60 = vld [vmem:[%s3345_s29] ss:$0 sm:$0xff] }
 0x7b1   : > { %1960 = vadd.xlane.f32.xlu0 %v1959_v24 }
 0x81c   : > { %v1965_v50 = vpop.xlane.xlu0 %1964 }
 0x81d   : > { %v1967_v5 = vmul.f32 %v1965_v50, %v3004_v12 }
 0x81f   : > { %v1970_v6 = vrot.slane %v1967_v5, 1 }
 0x821   : > { %v1974_v7 = vsub.f32 %v1944_v0, %v1970_v6 }
 0x823   : > { %v2020_v9 = vrot.slane %v1974_v7, 6  ;;  %v1976_v14 = vmul.f32 %v1974_v7, %v1974_v7 }
 0x824   : > { %v1961_v21 = vpop.xlane.xlu0 %1960 }
 0x825   : > { %v1966_v54 = vmul.f32 %v1961_v21, %v3004_v12  ;;  %v1979_v16 = vrot.slane %v1976_v14, 7  ;;  %v2043_v12 = vld [vmem:[%s3342_s2 + $0x10] sm:$0xff] }
 0x826   : > { %2065 = vmatpush.msra.mxu0 %v2043_v12 }
 0x827   : > { %v1973_v8 = vsub.f32 %v1943_v61, %v1966_v54  ;;  %v1985_v17 = vsel %vm1962_vm15, %v1979_v16, 0.0 }
 0x828   : > { %2066 = vmatpush.msra.mxu0 %v2042_v19 }
 0x829   : > { %v2019_v10 = vrot.slane %v1973_v8, 7  ;;  %v1975_v11 = vmul.f32 %v1973_v8, %v1973_v8 }
 0x82a   : > { %2067 = vmatpush.msra.mxu0 %v2041_v20 }
 0x82b   : > { %v1982_v13 = vsel %vm1958_vm0, %v1975_v11, 0.0  ;;  %v2022_v15 = vsel %vm2021_vm2, %v2020_v9, %v2019_v10 }
 0x82c   : > { %1983 = vadd.xlane.f32.xlu1 %v1982_v13  ;;  %v2024_v56 = vmul.f32 %v2548_v51, %v2022_v15 }
 0x834   : > { %1986 = vadd.xlane.f32.xlu1 %v1985_v17 }
 0x89f   : > { %v1984_v22 = vpop.xlane.xlu1 %1983 }
 0x8a0   : > { %v1988_v23 = vmul.f32 0.032258064, %v1984_v22 }
 0x8a2   : > { %2551 = vrsqrt.f32 %v1988_v23  ;;  %vm1997_vm3 = vcmp.eq.f32.partialorder %v1988_v23, inf  ;;  %v2000_v39 = vand.u32 2147483648, %v1988_v23  ;;  %vm1999_vm4 = vcmp.eq.f32.partialorder %v1988_v23, 0.0 }
 0x8a7   : > { %v1987_v25 = vpop.xlane.xlu1 %1986 }
 0x8a8   : > { %v2552_v26 = vpop.eup %2551  ;;  %v1989_v27 = vmul.f32 0.032258064, %v1987_v25 }
 0x8a9   : > { %v1991_v28 = vmul.f32 %v2552_v26, %v1988_v23 }
 0x8aa   : > { %2553 = vrsqrt.f32 %v1989_v27  ;;  %vm2009_vm5 = vcmp.eq.f32.partialorder %v1989_v27, inf  ;;  %v2012_v45 = vand.u32 2147483648, %v1989_v27  ;;  %vm2011_vm6 = vcmp.eq.f32.partialorder %v1989_v27, 0.0 }
 0x8ab   : > { %v1992_v29 = vmul.f32 %v2552_v26, %v1991_v28 }
 0x8ad   : > { %v1993_v30 = vmul.f32 0.5, %v1992_v29 }
 0x8af   : > { %v1994_v31 = vsub.f32 1.5, %v1993_v30 }
 0x8b0   : > { %v2554_v32 = vpop.eup %2553 }
 0x8b1   : > { %v2003_v33 = vmul.f32 %v2554_v32, %v1989_v27  ;;  %v1995_v34 = vmul.f32 %v2552_v26, %v1994_v31 }
 0x8b3   : > { %v1996_v35 = vmul.f32 %v1995_v34, %v1988_v23  ;;  %v2004_v36 = vmul.f32 %v2554_v32, %v2003_v33 }
 0x8b5   : > { %v1998_v37 = vsel %vm1997_vm3, %v1988_v23, %v1996_v35  ;;  %v2005_v38 = vmul.f32 0.5, %v2004_v36 }
 0x8b6   : > { %v2001_v41 = vsel %vm1999_vm4, %v2000_v39, %v1998_v37 }
 0x8b7   : > { %v2006_v40 = vsub.f32 1.5, %v2005_v38  ;;  %v2025_v44 = vadd.f32 1e-06, %v2001_v41 }
 0x8b9   : > { %v2007_v42 = vmul.f32 %v2554_v32, %v2006_v40  ;;  %2555 = vrcp.f32 %v2025_v44 }
 0x8bb   : > { %v2008_v43 = vmul.f32 %v2007_v42, %v1989_v27 }
 0x8bd   : > { %v2010_v46 = vsel %vm2009_vm5, %v1989_v27, %v2008_v43 }
 0x8be   : > { %v2013_v47 = vsel %vm2011_vm6, %v2012_v45, %v2010_v46 }
 0x8bf   : > { %v2026_v48 = vadd.f32 1e-06, %v2013_v47  ;;  %v2556_v49 = vpop.eup %2555 }
 0x8c0   : > { %v2032_v53 = vrot.slane %v2556_v49, 7 }
 0x8c1   : > { %2557 = vrcp.f32 %v2026_v48 }
 0x8c7   : > { %v2558_v52 = vpop.eup %2557 }
 0x8c8   : > { %v2033_v55 = vrot.slane %v2558_v52, 7 }
 0x8ca   : > { %v2034_v57 = vsel %vm2031_vm7, %v2032_v53, %v2033_v55 }
 0x8cb   : > { %v2036_v58 = vmul.f32 %v2034_v57, %v2024_v56 }
 0x8cd   : > { %v2040_v59 = vadd.f32 %v2549_v2, %v2036_v58 }
 0x8cf   : > { %2394 = vmatmul.msk.f32.vlgmr.msra.gmra.mxu0 %vm1027_vm1, %v2040_v59 }
 0x94c   : > { %v2069_v4 = vpop.f32.mrf.mxu0 }
 0x94d   : > { %v2070_v61 = vadd.f32 %v2550_v60, %v2069_v4 }
 0x94f   : > { %2073 = vst.msk [vmem:[#allocation8] sm:$0x3] %vm2072_vm8, %v2070_v61 }
 0x950 PF: > { %s3346_s1 = sld [smem:[#allocation15_spill]]  ;;  %s2716_s20 = smov [#allocation8]  }
 0x951   : > { %s3348_s8 = sld [smem:[#allocation34_spill]]  ;;  %s2082_s22 = sshll.u32 %s2716_s20, 4  ;;  %s2083_s22 = int_to_ptr.vmem [resolvable:$true] %s2082_s22 }
 0x956   : > { %s3347_s5 = sadd.s32 4294967295, %s3346_s1  }
 0x957   : > { %p2421_p2 = scmp.eq.s32.totalorder %s3347_s5, 1  ;;  %s2084_s28 = sshll.u32 %s3348_s8, 4  ;;  %s2085_s28 = int_to_ptr.hbm [resolvable:$true] %s2084_s28 }
 0x959   : > { %2410 = dma.vmem_to_hbm [thread:$0]  (%p2421_p2), %s2083_s22, 32, %s2085_s28, [#allocation5]  }
 0x95a   : > { %2680 = dma.done.wait (%p2421_p2), [#allocation5], 32  }
 0x95b   : > { %2682 = vsyncadd (%p2421_p2), [#allocation5], 4294967264 }
 0x95c PF: > { %s3349_s24 = sld [smem:[#allocation15_spill]] }
 0x95d   : > { %s3350_s3 = sld [smem:[#allocation12_spill]] }
 0x95e   : > { %s3351_s28 = sld [smem:[#allocation13_spill]] }
 0x95f   : > { %s3352_s29 = sld [smem:[#allocation17_spill]] }
 0x960   : > { %s3353_s30 = sld [smem:[#allocation14_spill]] }
 0x961   : > { %s3354_s4 = sld [smem:[#allocation16_spill]] }
 0x962   : > { %s39_s0 = sadd.s32 1, %s3349_s24  }
 0x963   : > { %p36_p3 = scmp.ge.s32.totalorder %s39_s0, 4  }
 0x965   :  { %38 = sbr.rel (!%p36_p3) target bundleno = 23 (0x17), region = 215 }
 0x96a   :  { %2098 = vsyncpa [#allocation4], 1 }
 0x96b   :  { %2100 = vsyncpa [#allocation4 + $0x1], 1 }
 0x96c   :  { %2101 = vsyncpa [#allocation7], 1 }
 0x96d   :  { %2103 = vsyncpa [#allocation7 + $0x1], 1 }
 0x96e   :  { %2104 = vsyncpa [#allocation5], 1 }
 0x96f   :  { %2106 = vsyncpa [#allocation5 + $0x1], 1 }

</bundles_post_ra>
